<compile_context>
chip_gen: v7x
topology: tpu7x:2x2x1
jax: 0.10.0
libtpu: 0.0.40
codegen_flags: <defaults>
</compile_context>

<pallas_src>
import jax
import jax.numpy as jnp
import numpy as np
from jax.experimental import pallas as pl
from jax.experimental.pallas import tpu as pltpu

_LANES = 128


def _crf_kernel(len_ref, x_ref, w_ref, b_ref, transT_ref,
                logits_ref, preds_ref, bp_ref):
    """One grid step = one block of B_blk sequences, batch on the 128-lane axis.

    len_ref:    (1, B_blk)     i32   per-sequence lengths (mask.sum(-1))
    x_ref:      (T, H, B_blk)  bf16  x[b, t, h] stored as xT[t, h, b]
    w_ref:      (C, H)         bf16  nn.Linear weight
    b_ref:      (C, 1)         f32   nn.Linear bias (column)
    transT_ref: (C, C)         f32   transitions^T (transT[j, i] = trans[i, j])
    logits_ref: (T, C, B_blk)  f32   out: logits^T (lane-dense)
    preds_ref:  (T, B_blk)     i32   out: Viterbi tags (lane-dense, 0 past length)
    bp_ref:     (T, C, B_blk)  i32   VMEM scratch: backpointers
    """
    T, _, B_blk = x_ref.shape
    C = transT_ref.shape[0]

    # ---- loop-invariants hoisted once (JAX does not CSE broadcast_in_dim) ----
    w = w_ref[...]                                            # (C, H) bf16
    bias_full = jnp.broadcast_to(b_ref[...], (C, B_blk))      # (C, B_blk) f32
    len_row = len_ref[...]                                    # (1, B_blk) i32
    last_pos = len_row - 1
    transT = transT_ref[...]
    # column i holds trans[i, :] laid along the tag (sublane) dim
    tcols = [transT[:, i:i + 1] for i in range(C)]            # C x (C, 1)
    bp_zero = jnp.zeros((C, B_blk), jnp.int32)

    def tag_logits(t):
        # (C, B_blk) = W @ x_t^T + b : batch stays on the 128-lane axis
        return jnp.dot(w, x_ref[t], preferred_element_type=jnp.float32) + bias_full

    # ---- t = 0 ----
    slab = tag_logits(0)
    logits_ref[0] = slab
    delta = slab                                              # (C, B_blk), carried in vregs

    # ---- Viterbi forward recursion (static T, C -> fully unrolled) ----
    # TODO(synk): for large T switch to lax.fori_loop(..., unroll=k) to bound live ranges.
    for t in range(1, T):
        slab = tag_logits(t)
        logits_ref[t] = slab
        # fused max + first-argmax over the previous tag i; new-tag dim rides on
        # sublanes, batch on lanes -> lane-dense VPU chain, no cross-lane ops.
        best = delta[0:1, :] + tcols[0]                       # (C, B_blk)
        bp = bp_zero
        for i in range(1, C):
            cand = delta[i:i + 1, :] + tcols[i]
            take = cand > best                                # strict ">" keeps first argmax
            best = jnp.where(take, cand, best)
            bp = jnp.where(take, i, bp)
        bp_ref[t] = bp                                        # lane-dense VMEM store
        # freeze delta once t >= length so it ends holding the row at length-1
        delta = jnp.where(t < len_row, best + slab, delta)

    # ---- last tag per sequence: first argmax over tags of the final delta ----
    best = delta[0:1, :]
    last_tag = jnp.zeros((1, B_blk), jnp.int32)
    for j in range(1, C):
        cand = delta[j:j + 1, :]
        take = cand > best
        best = jnp.where(take, cand, best)
        last_tag = jnp.where(take, j, last_tag)

    # ---- backtrace in-kernel; one lane-dense (1, B_blk) row store per step ----
    tag = last_tag
    for t in range(T - 1, -1, -1):
        bp_next = bp_ref[min(t + 1, T - 1)]                   # (C, B_blk)
        gathered = bp_next[0:1, :]
        for j in range(1, C):                                 # gather bp_next[tag[b], b]
            gathered = jnp.where(tag == j, bp_next[j:j + 1, :], gathered)
        tag = jnp.where(t == last_pos, last_tag, gathered)
        preds_ref[pl.ds(t, 1), :] = jnp.where(t <= last_pos, tag, 0)


def _round_up(a, m):
    return (a + m - 1) // m * m


@jax.jit
def crf_forward(x, mask, weight, bias, transitions):
    B, T, H = x.shape
    C = weight.shape[0]

    # batch block: a multiple of 128 so the batch fills the lane axis; capped at
    # 512 so registers and the ~1 MiB working set stay comfortable on every
    # generation (v5e 16 MiB scoped VMEM).  Large batches give n_blk >= 2 so the
    # "parallel" grid axis can shard across v7x's two TensorCores.
    B_blk = min(512, _round_up(B, _LANES))
    B_pad = _round_up(B, B_blk)
    n_blk = B_pad // B_blk

    if B_pad != B:
        x = jnp.pad(x, ((0, B_pad - B), (0, 0), (0, 0)))
        mask = jnp.pad(mask, ((0, B_pad - B), (0, 0)))

    lengths = mask.astype(jnp.int32).sum(axis=1).reshape(1, B_pad)    # (1, B_pad)

    # One explicit relayout of x: (B, T, H) -> (T, H, B), batch on the fastest
    # axis, cast to bf16 in the same pass (halves the HBM bytes of the re-read).
    # This buys a fully lane-dense kernel (Viterbi state, logits, preds, bp).
    # TODO(synk): if the producing layer can emit (T, H, B) bf16 directly this
    # extra HBM pass over x disappears entirely.
    xT = jnp.transpose(x, (1, 2, 0)).astype(jnp.bfloat16)             # (T, H, B_pad)
    w_bf = weight.astype(jnp.bfloat16)                                # (C, H)
    b_col = bias.astype(jnp.float32).reshape(C, 1)                    # (C, 1)
    transT = jnp.transpose(transitions).astype(jnp.float32)           # (C, C)

    out_shapes = (
        jax.ShapeDtypeStruct((T, C, B_pad), jnp.float32),             # logits^T
        jax.ShapeDtypeStruct((T, B_pad), jnp.int32),                  # preds^T
    )
    grid_spec = pltpu.PrefetchScalarGridSpec(
        num_scalar_prefetch=0,
        grid=(n_blk,),
        in_specs=[
            pl.BlockSpec((1, B_blk), lambda i: (0, i)),               # lengths
            pl.BlockSpec((T, H, B_blk), lambda i: (0, 0, i)),         # x^T (bf16)
            pl.BlockSpec((C, H), lambda i: (0, 0)),                   # W
            pl.BlockSpec((C, 1), lambda i: (0, 0)),                   # bias
            pl.BlockSpec((C, C), lambda i: (0, 0)),                   # transitions^T
        ],
        out_specs=[
            pl.BlockSpec((T, C, B_blk), lambda i: (0, 0, i)),         # logits^T
            pl.BlockSpec((T, B_blk), lambda i: (0, i)),               # preds^T
        ],
        scratch_shapes=[pltpu.VMEM((T, C, B_blk), jnp.int32)],        # backpointers
    )
    logits_t, preds_t = pl.pallas_call(
        _crf_kernel,
        out_shape=out_shapes,
        grid_spec=grid_spec,
        compiler_params=pltpu.CompilerParams(
            dimension_semantics=("parallel",),   # batch blocks are independent
        ),
    )(lengths, xT, w_bf, b_col, transT)

    # tiny wrapper-side un-transposes (only B*T*C / B*T elements)
    logits = jnp.transpose(logits_t, (2, 0, 1))[:B]                   # (B, T, C)
    preds = jnp.transpose(preds_t, (1, 0))[:B]                        # (B, T)
    # TODO(synk): AllenNLP's zero_pad pads preds to max(lengths) (dynamic width);
    # we keep static T, identical whenever at least one sequence is full-length.
    return logits, preds


def viterbi_reference(logits, mask, transitions):
    """Pure numpy reference of AllenNLP viterbi_tags (no start/end transitions) + zero_pad."""
    logits = np.asarray(logits, np.float32)
    trans = np.asarray(transitions, np.float32)
    mask = np.asarray(mask)
    B, T, C = logits.shape
    lengths = mask.sum(1).astype(int)
    preds = np.zeros((B, T), dtype=np.int32)
    for b in range(B):
        L = int(lengths[b])
        if L == 0:
            continue
        delta = logits[b, 0].copy()
        bps = np.zeros((T, C), dtype=np.int64)
        for t in range(1, L):
            scores = delta[:, None] + trans
            bps[t] = scores.argmax(axis=0)
            delta = scores.max(axis=0) + logits[b, t]
        tags = np.zeros(L, dtype=np.int64)
        tags[L - 1] = int(delta.argmax())
        for t in range(L - 2, -1, -1):
            tags[t] = bps[t + 1, tags[t + 1]]
        preds[b, :L] = tags
    return preds


if __name__ == "__main__":
    B, T, H, C = 2, 8, 32, 5
    key = jax.random.PRNGKey(0)
    kx, kw, kb, kt = jax.random.split(key, 4)
    x = jax.random.normal(kx, (B, T, H), jnp.float32)
    weight = jax.random.normal(kw, (C, H), jnp.float32) * 0.1       # nn.Linear(H, C) weight
    bias = jax.random.normal(kb, (C,), jnp.float32) * 0.1           # nn.Linear bias
    transitions = jax.random.normal(kt, (C, C), jnp.float32)        # CRF transition matrix
    lengths = jnp.array([T, T - 3], jnp.int32)
    mask = jnp.arange(T)[None, :] < lengths[:, None]                # (B, T) bool prefix mask

    logits, preds = crf_forward(x, mask, weight, bias, transitions)
    jax.block_until_ready((logits, preds))

    # correctness checks vs. pure numpy (bf16 matmul -> loose tolerance on logits;
    # the Viterbi reference decodes from the kernel's own f32 logits, so exact)
    ref_logits = np.asarray(x) @ np.asarray(weight).T + np.asarray(bias)
    np.testing.assert_allclose(np.asarray(logits), ref_logits, rtol=2e-2, atol=3e-2)
    ref_preds = viterbi_reference(logits, mask, transitions)
    np.testing.assert_array_equal(np.asarray(preds), ref_preds)

    print("KERNEL_OK")
</pallas_src>

<mosaic_0001>
module attributes {stable_mosaic.version = 11 : i64} {
  func.func @_crf_kernel(%arg0: i32, %arg1: memref<1x128xi32, #tpu.memory_space<vmem>>, %arg2: memref<8x32x128xbf16, #tpu.memory_space<vmem>>, %arg3: memref<5x32xbf16, #tpu.memory_space<vmem>>, %arg4: memref<5x1xf32, #tpu.memory_space<vmem>>, %arg5: memref<5x5xf32, #tpu.memory_space<vmem>>, %arg6: memref<8x5x128xf32, #tpu.memory_space<vmem>>, %arg7: memref<8x128xi32, #tpu.memory_space<vmem>>, %arg8: memref<8x5x128xi32, #tpu.memory_space<vmem>>) attributes {dimension_semantics = [#tpu.dimension_semantics<parallel>], iteration_bounds = array<i64: 1>, scalar_prefetch = 0 : i64, scratch_operands = 1 : i64, tpu.core_type = #tpu.core_type<tc>, window_params = [{transform_indices = @transform_0, window_bounds = array<i64: 1, 128>}, {transform_indices = @transform_1, window_bounds = array<i64: 8, 32, 128>}, {pipeline_mode = #tpu.pipeline_mode<synchronous>, transform_indices = @transform_2, window_bounds = array<i64: 5, 32>}, {pipeline_mode = #tpu.pipeline_mode<synchronous>, transform_indices = @transform_3, window_bounds = array<i64: 5, 1>}, {pipeline_mode = #tpu.pipeline_mode<synchronous>, transform_indices = @transform_4, window_bounds = array<i64: 5, 5>}, {transform_indices = @transform_5, window_bounds = array<i64: 8, 5, 128>}, {transform_indices = @transform_6, window_bounds = array<i64: 8, 128>}]} {
    %c0 = arith.constant 0 : index
    %c0_0 = arith.constant 0 : index
    %0 = vector.load %arg3[%c0, %c0_0] : memref<5x32xbf16, #tpu.memory_space<vmem>>, vector<5x32xbf16>
    %c0_1 = arith.constant 0 : index
    %c0_2 = arith.constant 0 : index
    %1 = vector.load %arg4[%c0_1, %c0_2] : memref<5x1xf32, #tpu.memory_space<vmem>>, vector<5x1xf32>
    %2 = vector.shape_cast %1 : vector<5x1xf32> to vector<5x1xf32>
    %3 = vector.broadcast %2 : vector<5x1xf32> to vector<5x128xf32>
    %c0_3 = arith.constant 0 : index
    %c0_4 = arith.constant 0 : index
    %4 = vector.load %arg1[%c0_3, %c0_4] : memref<1x128xi32, #tpu.memory_space<vmem>>, vector<1x128xi32>
    %c1_i32 = arith.constant 1 : i32
    %5 = vector.broadcast %c1_i32 : i32 to vector<1x128xi32>
    %6 = arith.subi %4, %5 : vector<1x128xi32>
    %c0_5 = arith.constant 0 : index
    %c0_6 = arith.constant 0 : index
    %7 = vector.load %arg5[%c0_5, %c0_6] : memref<5x5xf32, #tpu.memory_space<vmem>>, vector<5x5xf32>
    %8 = vector.extract_strided_slice %7 {offsets = [0, 0], sizes = [5, 1], strides = [1, 1]} : vector<5x5xf32> to vector<5x1xf32>
    %9 = vector.extract_strided_slice %7 {offsets = [0, 1], sizes = [5, 1], strides = [1, 1]} : vector<5x5xf32> to vector<5x1xf32>
    %10 = vector.extract_strided_slice %7 {offsets = [0, 2], sizes = [5, 1], strides = [1, 1]} : vector<5x5xf32> to vector<5x1xf32>
    %11 = vector.extract_strided_slice %7 {offsets = [0, 3], sizes = [5, 1], strides = [1, 1]} : vector<5x5xf32> to vector<5x1xf32>
    %12 = vector.extract_strided_slice %7 {offsets = [0, 4], sizes = [5, 1], strides = [1, 1]} : vector<5x5xf32> to vector<5x1xf32>
    %c0_i32 = arith.constant 0 : i32
    %13 = vector.broadcast %c0_i32 : i32 to vector<5x128xi32>
    %c0_7 = arith.constant 0 : index
    %c0_8 = arith.constant 0 : index
    %c0_9 = arith.constant 0 : index
    %14 = vector.load %arg2[%c0_7, %c0_8, %c0_9] : memref<8x32x128xbf16, #tpu.memory_space<vmem>>, vector<1x32x128xbf16>
    %15 = vector.shape_cast %14 : vector<1x32x128xbf16> to vector<32x128xbf16>
    %cst = arith.constant dense<0.000000e+00> : vector<5x128xf32>
    %16 = tpu.matmul %0, %15, %cst {dimension_numbers = #tpu.dot_dimension_numbers<[1], [0], [0], [1], [0, 0, 1, 1], [], []>} : vector<5x32xbf16>, vector<32x128xbf16>, vector<5x128xf32> -> vector<5x128xf32>
    %17 = arith.addf %16, %3 : vector<5x128xf32>
    %c0_10 = arith.constant 0 : index
    %c0_11 = arith.constant 0 : index
    %c0_12 = arith.constant 0 : index
    %18 = vector.load %arg6[%c0_10, %c0_11, %c0_12] : memref<8x5x128xf32, #tpu.memory_space<vmem>>, vector<1x5x128xf32>
    %19 = vector.shape_cast %18 : vector<1x5x128xf32> to vector<5x128xf32>
    %20 = vector.shape_cast %17 : vector<5x128xf32> to vector<1x5x128xf32>
    tpu.vector_store %arg6[%c0_10, %c0_11, %c0_12], %20 {strides = array<i32>} : memref<8x5x128xf32, #tpu.memory_space<vmem>>, vector<1x5x128xf32>,
    %c1 = arith.constant 1 : index
    %c0_13 = arith.constant 0 : index
    %c0_14 = arith.constant 0 : index
    %21 = vector.load %arg2[%c1, %c0_13, %c0_14] : memref<8x32x128xbf16, #tpu.memory_space<vmem>>, vector<1x32x128xbf16>
    %22 = vector.shape_cast %21 : vector<1x32x128xbf16> to vector<32x128xbf16>
    %cst_15 = arith.constant dense<0.000000e+00> : vector<5x128xf32>
    %23 = tpu.matmul %0, %22, %cst_15 {dimension_numbers = #tpu.dot_dimension_numbers<[1], [0], [0], [1], [0, 0, 1, 1], [], []>} : vector<5x32xbf16>, vector<32x128xbf16>, vector<5x128xf32> -> vector<5x128xf32>
    %24 = arith.addf %23, %3 : vector<5x128xf32>
    %c1_16 = arith.constant 1 : index
    %c0_17 = arith.constant 0 : index
    %c0_18 = arith.constant 0 : index
    %25 = vector.load %arg6[%c1_16, %c0_17, %c0_18] : memref<8x5x128xf32, #tpu.memory_space<vmem>>, vector<1x5x128xf32>
    %26 = vector.shape_cast %25 : vector<1x5x128xf32> to vector<5x128xf32>
    %27 = vector.shape_cast %24 : vector<5x128xf32> to vector<1x5x128xf32>
    tpu.vector_store %arg6[%c1_16, %c0_17, %c0_18], %27 {strides = array<i32>} : memref<8x5x128xf32, #tpu.memory_space<vmem>>, vector<1x5x128xf32>,
    %28 = vector.extract_strided_slice %17 {offsets = [0, 0], sizes = [1, 128], strides = [1, 1]} : vector<5x128xf32> to vector<1x128xf32>
    %29 = vector.broadcast %28 : vector<1x128xf32> to vector<5x128xf32>
    %30 = vector.broadcast %8 : vector<5x1xf32> to vector<5x128xf32>
    %31 = arith.addf %29, %30 : vector<5x128xf32>
    %32 = vector.extract_strided_slice %17 {offsets = [1, 0], sizes = [1, 128], strides = [1, 1]} : vector<5x128xf32> to vector<1x128xf32>
    %33 = vector.broadcast %32 : vector<1x128xf32> to vector<5x128xf32>
    %34 = vector.broadcast %9 : vector<5x1xf32> to vector<5x128xf32>
    %35 = arith.addf %33, %34 : vector<5x128xf32>
    %36 = arith.cmpf ogt, %35, %31 : vector<5x128xf32>
    %37 = arith.select %36, %35, %31 : vector<5x128xi1>, vector<5x128xf32>
    %c1_i32_19 = arith.constant 1 : i32
    %38 = vector.broadcast %c1_i32_19 : i32 to vector<5x128xi32>
    %39 = arith.select %36, %38, %13 : vector<5x128xi1>, vector<5x128xi32>
    %40 = vector.extract_strided_slice %17 {offsets = [2, 0], sizes = [1, 128], strides = [1, 1]} : vector<5x128xf32> to vector<1x128xf32>
    %41 = vector.broadcast %40 : vector<1x128xf32> to vector<5x128xf32>
    %42 = vector.broadcast %10 : vector<5x1xf32> to vector<5x128xf32>
    %43 = arith.addf %41, %42 : vector<5x128xf32>
    %44 = arith.cmpf ogt, %43, %37 : vector<5x128xf32>
    %45 = arith.select %44, %43, %37 : vector<5x128xi1>, vector<5x128xf32>
    %c2_i32 = arith.constant 2 : i32
    %46 = vector.broadcast %c2_i32 : i32 to vector<5x128xi32>
    %47 = arith.select %44, %46, %39 : vector<5x128xi1>, vector<5x128xi32>
    %48 = vector.extract_strided_slice %17 {offsets = [3, 0], sizes = [1, 128], strides = [1, 1]} : vector<5x128xf32> to vector<1x128xf32>
    %49 = vector.broadcast %48 : vector<1x128xf32> to vector<5x128xf32>
    %50 = vector.broadcast %11 : vector<5x1xf32> to vector<5x128xf32>
    %51 = arith.addf %49, %50 : vector<5x128xf32>
    %52 = arith.cmpf ogt, %51, %45 : vector<5x128xf32>
    %53 = arith.select %52, %51, %45 : vector<5x128xi1>, vector<5x128xf32>
    %c3_i32 = arith.constant 3 : i32
    %54 = vector.broadcast %c3_i32 : i32 to vector<5x128xi32>
    %55 = arith.select %52, %54, %47 : vector<5x128xi1>, vector<5x128xi32>
    %56 = vector.extract_strided_slice %17 {offsets = [4, 0], sizes = [1, 128], strides = [1, 1]} : vector<5x128xf32> to vector<1x128xf32>
    %57 = vector.broadcast %56 : vector<1x128xf32> to vector<5x128xf32>
    %58 = vector.broadcast %12 : vector<5x1xf32> to vector<5x128xf32>
    %59 = arith.addf %57, %58 : vector<5x128xf32>
    %60 = arith.cmpf ogt, %59, %53 : vector<5x128xf32>
    %61 = arith.select %60, %59, %53 : vector<5x128xi1>, vector<5x128xf32>
    %c4_i32 = arith.constant 4 : i32
    %62 = vector.broadcast %c4_i32 : i32 to vector<5x128xi32>
    %63 = arith.select %60, %62, %55 : vector<5x128xi1>, vector<5x128xi32>
    %c1_20 = arith.constant 1 : index
    %c0_21 = arith.constant 0 : index
    %c0_22 = arith.constant 0 : index
    %64 = vector.load %arg8[%c1_20, %c0_21, %c0_22] : memref<8x5x128xi32, #tpu.memory_space<vmem>>, vector<1x5x128xi32>
    %65 = vector.shape_cast %64 : vector<1x5x128xi32> to vector<5x128xi32>
    %66 = vector.shape_cast %63 : vector<5x128xi32> to vector<1x5x128xi32>
    tpu.vector_store %arg8[%c1_20, %c0_21, %c0_22], %66 {strides = array<i32>} : memref<8x5x128xi32, #tpu.memory_space<vmem>>, vector<1x5x128xi32>,
    %c1_i32_23 = arith.constant 1 : i32
    %67 = vector.broadcast %c1_i32_23 : i32 to vector<1x128xi32>
    %68 = arith.cmpi sgt, %4, %67 : vector<1x128xi32>
    %69 = arith.addf %61, %24 : vector<5x128xf32>
    %70 = vector.shape_cast %68 : vector<1x128xi1> to vector<1x128xi1>
    %71 = vector.broadcast %70 : vector<1x128xi1> to vector<5x128xi1>
    %72 = arith.select %71, %69, %17 : vector<5x128xi1>, vector<5x128xf32>
    %c2 = arith.constant 2 : index
    %c0_24 = arith.constant 0 : index
    %c0_25 = arith.constant 0 : index
    %73 = vector.load %arg2[%c2, %c0_24, %c0_25] : memref<8x32x128xbf16, #tpu.memory_space<vmem>>, vector<1x32x128xbf16>
    %74 = vector.shape_cast %73 : vector<1x32x128xbf16> to vector<32x128xbf16>
    %cst_26 = arith.constant dense<0.000000e+00> : vector<5x128xf32>
    %75 = tpu.matmul %0, %74, %cst_26 {dimension_numbers = #tpu.dot_dimension_numbers<[1], [0], [0], [1], [0, 0, 1, 1], [], []>} : vector<5x32xbf16>, vector<32x128xbf16>, vector<5x128xf32> -> vector<5x128xf32>
    %76 = arith.addf %75, %3 : vector<5x128xf32>
    %c2_27 = arith.constant 2 : index
    %c0_28 = arith.constant 0 : index
    %c0_29 = arith.constant 0 : index
    %77 = vector.load %arg6[%c2_27, %c0_28, %c0_29] : memref<8x5x128xf32, #tpu.memory_space<vmem>>, vector<1x5x128xf32>
    %78 = vector.shape_cast %77 : vector<1x5x128xf32> to vector<5x128xf32>
    %79 = vector.shape_cast %76 : vector<5x128xf32> to vector<1x5x128xf32>
    tpu.vector_store %arg6[%c2_27, %c0_28, %c0_29], %79 {strides = array<i32>} : memref<8x5x128xf32, #tpu.memory_space<vmem>>, vector<1x5x128xf32>,
    %80 = vector.extract_strided_slice %72 {offsets = [0, 0], sizes = [1, 128], strides = [1, 1]} : vector<5x128xf32> to vector<1x128xf32>
    %81 = vector.broadcast %80 : vector<1x128xf32> to vector<5x128xf32>
    %82 = vector.broadcast %8 : vector<5x1xf32> to vector<5x128xf32>
    %83 = arith.addf %81, %82 : vector<5x128xf32>
    %84 = vector.extract_strided_slice %72 {offsets = [1, 0], sizes = [1, 128], strides = [1, 1]} : vector<5x128xf32> to vector<1x128xf32>
    %85 = vector.broadcast %84 : vector<1x128xf32> to vector<5x128xf32>
    %86 = vector.broadcast %9 : vector<5x1xf32> to vector<5x128xf32>
    %87 = arith.addf %85, %86 : vector<5x128xf32>
    %88 = arith.cmpf ogt, %87, %83 : vector<5x128xf32>
    %89 = arith.select %88, %87, %83 : vector<5x128xi1>, vector<5x128xf32>
    %c1_i32_30 = arith.constant 1 : i32
    %90 = vector.broadcast %c1_i32_30 : i32 to vector<5x128xi32>
    %91 = arith.select %88, %90, %13 : vector<5x128xi1>, vector<5x128xi32>
    %92 = vector.extract_strided_slice %72 {offsets = [2, 0], sizes = [1, 128], strides = [1, 1]} : vector<5x128xf32> to vector<1x128xf32>
    %93 = vector.broadcast %92 : vector<1x128xf32> to vector<5x128xf32>
    %94 = vector.broadcast %10 : vector<5x1xf32> to vector<5x128xf32>
    %95 = arith.addf %93, %94 : vector<5x128xf32>
    %96 = arith.cmpf ogt, %95, %89 : vector<5x128xf32>
    %97 = arith.select %96, %95, %89 : vector<5x128xi1>, vector<5x128xf32>
    %c2_i32_31 = arith.constant 2 : i32
    %98 = vector.broadcast %c2_i32_31 : i32 to vector<5x128xi32>
    %99 = arith.select %96, %98, %91 : vector<5x128xi1>, vector<5x128xi32>
    %100 = vector.extract_strided_slice %72 {offsets = [3, 0], sizes = [1, 128], strides = [1, 1]} : vector<5x128xf32> to vector<1x128xf32>
    %101 = vector.broadcast %100 : vector<1x128xf32> to vector<5x128xf32>
    %102 = vector.broadcast %11 : vector<5x1xf32> to vector<5x128xf32>
    %103 = arith.addf %101, %102 : vector<5x128xf32>
    %104 = arith.cmpf ogt, %103, %97 : vector<5x128xf32>
    %105 = arith.select %104, %103, %97 : vector<5x128xi1>, vector<5x128xf32>
    %c3_i32_32 = arith.constant 3 : i32
    %106 = vector.broadcast %c3_i32_32 : i32 to vector<5x128xi32>
    %107 = arith.select %104, %106, %99 : vector<5x128xi1>, vector<5x128xi32>
    %108 = vector.extract_strided_slice %72 {offsets = [4, 0], sizes = [1, 128], strides = [1, 1]} : vector<5x128xf32> to vector<1x128xf32>
    %109 = vector.broadcast %108 : vector<1x128xf32> to vector<5x128xf32>
    %110 = vector.broadcast %12 : vector<5x1xf32> to vector<5x128xf32>
    %111 = arith.addf %109, %110 : vector<5x128xf32>
    %112 = arith.cmpf ogt, %111, %105 : vector<5x128xf32>
    %113 = arith.select %112, %111, %105 : vector<5x128xi1>, vector<5x128xf32>
    %c4_i32_33 = arith.constant 4 : i32
    %114 = vector.broadcast %c4_i32_33 : i32 to vector<5x128xi32>
    %115 = arith.select %112, %114, %107 : vector<5x128xi1>, vector<5x128xi32>
    %c2_34 = arith.constant 2 : index
    %c0_35 = arith.constant 0 : index
    %c0_36 = arith.constant 0 : index
    %116 = vector.load %arg8[%c2_34, %c0_35, %c0_36] : memref<8x5x128xi32, #tpu.memory_space<vmem>>, vector<1x5x128xi32>
    %117 = vector.shape_cast %116 : vector<1x5x128xi32> to vector<5x128xi32>
    %118 = vector.shape_cast %115 : vector<5x128xi32> to vector<1x5x128xi32>
    tpu.vector_store %arg8[%c2_34, %c0_35, %c0_36], %118 {strides = array<i32>} : memref<8x5x128xi32, #tpu.memory_space<vmem>>, vector<1x5x128xi32>,
    %c2_i32_37 = arith.constant 2 : i32
    %119 = vector.broadcast %c2_i32_37 : i32 to vector<1x128xi32>
    %120 = arith.cmpi sgt, %4, %119 : vector<1x128xi32>
    %121 = arith.addf %113, %76 : vector<5x128xf32>
    %122 = vector.shape_cast %120 : vector<1x128xi1> to vector<1x128xi1>
    %123 = vector.broadcast %122 : vector<1x128xi1> to vector<5x128xi1>
    %124 = arith.select %123, %121, %72 : vector<5x128xi1>, vector<5x128xf32>
    %c3 = arith.constant 3 : index
    %c0_38 = arith.constant 0 : index
    %c0_39 = arith.constant 0 : index
    %125 = vector.load %arg2[%c3, %c0_38, %c0_39] : memref<8x32x128xbf16, #tpu.memory_space<vmem>>, vector<1x32x128xbf16>
    %126 = vector.shape_cast %125 : vector<1x32x128xbf16> to vector<32x128xbf16>
    %cst_40 = arith.constant dense<0.000000e+00> : vector<5x128xf32>
    %127 = tpu.matmul %0, %126, %cst_40 {dimension_numbers = #tpu.dot_dimension_numbers<[1], [0], [0], [1], [0, 0, 1, 1], [], []>} : vector<5x32xbf16>, vector<32x128xbf16>, vector<5x128xf32> -> vector<5x128xf32>
    %128 = arith.addf %127, %3 : vector<5x128xf32>
    %c3_41 = arith.constant 3 : index
    %c0_42 = arith.constant 0 : index
    %c0_43 = arith.constant 0 : index
    %129 = vector.load %arg6[%c3_41, %c0_42, %c0_43] : memref<8x5x128xf32, #tpu.memory_space<vmem>>, vector<1x5x128xf32>
    %130 = vector.shape_cast %129 : vector<1x5x128xf32> to vector<5x128xf32>
    %131 = vector.shape_cast %128 : vector<5x128xf32> to vector<1x5x128xf32>
    tpu.vector_store %arg6[%c3_41, %c0_42, %c0_43], %131 {strides = array<i32>} : memref<8x5x128xf32, #tpu.memory_space<vmem>>, vector<1x5x128xf32>,
    %132 = vector.extract_strided_slice %124 {offsets = [0, 0], sizes = [1, 128], strides = [1, 1]} : vector<5x128xf32> to vector<1x128xf32>
    %133 = vector.broadcast %132 : vector<1x128xf32> to vector<5x128xf32>
    %134 = vector.broadcast %8 : vector<5x1xf32> to vector<5x128xf32>
    %135 = arith.addf %133, %134 : vector<5x128xf32>
    %136 = vector.extract_strided_slice %124 {offsets = [1, 0], sizes = [1, 128], strides = [1, 1]} : vector<5x128xf32> to vector<1x128xf32>
    %137 = vector.broadcast %136 : vector<1x128xf32> to vector<5x128xf32>
    %138 = vector.broadcast %9 : vector<5x1xf32> to vector<5x128xf32>
    %139 = arith.addf %137, %138 : vector<5x128xf32>
    %140 = arith.cmpf ogt, %139, %135 : vector<5x128xf32>
    %141 = arith.select %140, %139, %135 : vector<5x128xi1>, vector<5x128xf32>
    %c1_i32_44 = arith.constant 1 : i32
    %142 = vector.broadcast %c1_i32_44 : i32 to vector<5x128xi32>
    %143 = arith.select %140, %142, %13 : vector<5x128xi1>, vector<5x128xi32>
    %144 = vector.extract_strided_slice %124 {offsets = [2, 0], sizes = [1, 128], strides = [1, 1]} : vector<5x128xf32> to vector<1x128xf32>
    %145 = vector.broadcast %144 : vector<1x128xf32> to vector<5x128xf32>
    %146 = vector.broadcast %10 : vector<5x1xf32> to vector<5x128xf32>
    %147 = arith.addf %145, %146 : vector<5x128xf32>
    %148 = arith.cmpf ogt, %147, %141 : vector<5x128xf32>
    %149 = arith.select %148, %147, %141 : vector<5x128xi1>, vector<5x128xf32>
    %c2_i32_45 = arith.constant 2 : i32
    %150 = vector.broadcast %c2_i32_45 : i32 to vector<5x128xi32>
    %151 = arith.select %148, %150, %143 : vector<5x128xi1>, vector<5x128xi32>
    %152 = vector.extract_strided_slice %124 {offsets = [3, 0], sizes = [1, 128], strides = [1, 1]} : vector<5x128xf32> to vector<1x128xf32>
    %153 = vector.broadcast %152 : vector<1x128xf32> to vector<5x128xf32>
    %154 = vector.broadcast %11 : vector<5x1xf32> to vector<5x128xf32>
    %155 = arith.addf %153, %154 : vector<5x128xf32>
    %156 = arith.cmpf ogt, %155, %149 : vector<5x128xf32>
    %157 = arith.select %156, %155, %149 : vector<5x128xi1>, vector<5x128xf32>
    %c3_i32_46 = arith.constant 3 : i32
    %158 = vector.broadcast %c3_i32_46 : i32 to vector<5x128xi32>
    %159 = arith.select %156, %158, %151 : vector<5x128xi1>, vector<5x128xi32>
    %160 = vector.extract_strided_slice %124 {offsets = [4, 0], sizes = [1, 128], strides = [1, 1]} : vector<5x128xf32> to vector<1x128xf32>
    %161 = vector.broadcast %160 : vector<1x128xf32> to vector<5x128xf32>
    %162 = vector.broadcast %12 : vector<5x1xf32> to vector<5x128xf32>
    %163 = arith.addf %161, %162 : vector<5x128xf32>
    %164 = arith.cmpf ogt, %163, %157 : vector<5x128xf32>
    %165 = arith.select %164, %163, %157 : vector<5x128xi1>, vector<5x128xf32>
    %c4_i32_47 = arith.constant 4 : i32
    %166 = vector.broadcast %c4_i32_47 : i32 to vector<5x128xi32>
    %167 = arith.select %164, %166, %159 : vector<5x128xi1>, vector<5x128xi32>
    %c3_48 = arith.constant 3 : index
    %c0_49 = arith.constant 0 : index
    %c0_50 = arith.constant 0 : index
    %168 = vector.load %arg8[%c3_48, %c0_49, %c0_50] : memref<8x5x128xi32, #tpu.memory_space<vmem>>, vector<1x5x128xi32>
    %169 = vector.shape_cast %168 : vector<1x5x128xi32> to vector<5x128xi32>
    %170 = vector.shape_cast %167 : vector<5x128xi32> to vector<1x5x128xi32>
    tpu.vector_store %arg8[%c3_48, %c0_49, %c0_50], %170 {strides = array<i32>} : memref<8x5x128xi32, #tpu.memory_space<vmem>>, vector<1x5x128xi32>,
    %c3_i32_51 = arith.constant 3 : i32
    %171 = vector.broadcast %c3_i32_51 : i32 to vector<1x128xi32>
    %172 = arith.cmpi sgt, %4, %171 : vector<1x128xi32>
    %173 = arith.addf %165, %128 : vector<5x128xf32>
    %174 = vector.shape_cast %172 : vector<1x128xi1> to vector<1x128xi1>
    %175 = vector.broadcast %174 : vector<1x128xi1> to vector<5x128xi1>
    %176 = arith.select %175, %173, %124 : vector<5x128xi1>, vector<5x128xf32>
    %c4 = arith.constant 4 : index
    %c0_52 = arith.constant 0 : index
    %c0_53 = arith.constant 0 : index
    %177 = vector.load %arg2[%c4, %c0_52, %c0_53] : memref<8x32x128xbf16, #tpu.memory_space<vmem>>, vector<1x32x128xbf16>
    %178 = vector.shape_cast %177 : vector<1x32x128xbf16> to vector<32x128xbf16>
    %cst_54 = arith.constant dense<0.000000e+00> : vector<5x128xf32>
    %179 = tpu.matmul %0, %178, %cst_54 {dimension_numbers = #tpu.dot_dimension_numbers<[1], [0], [0], [1], [0, 0, 1, 1], [], []>} : vector<5x32xbf16>, vector<32x128xbf16>, vector<5x128xf32> -> vector<5x128xf32>
    %180 = arith.addf %179, %3 : vector<5x128xf32>
    %c4_55 = arith.constant 4 : index
    %c0_56 = arith.constant 0 : index
    %c0_57 = arith.constant 0 : index
    %181 = vector.load %arg6[%c4_55, %c0_56, %c0_57] : memref<8x5x128xf32, #tpu.memory_space<vmem>>, vector<1x5x128xf32>
    %182 = vector.shape_cast %181 : vector<1x5x128xf32> to vector<5x128xf32>
    %183 = vector.shape_cast %180 : vector<5x128xf32> to vector<1x5x128xf32>
    tpu.vector_store %arg6[%c4_55, %c0_56, %c0_57], %183 {strides = array<i32>} : memref<8x5x128xf32, #tpu.memory_space<vmem>>, vector<1x5x128xf32>,
    %184 = vector.extract_strided_slice %176 {offsets = [0, 0], sizes = [1, 128], strides = [1, 1]} : vector<5x128xf32> to vector<1x128xf32>
    %185 = vector.broadcast %184 : vector<1x128xf32> to vector<5x128xf32>
    %186 = vector.broadcast %8 : vector<5x1xf32> to vector<5x128xf32>
    %187 = arith.addf %185, %186 : vector<5x128xf32>
    %188 = vector.extract_strided_slice %176 {offsets = [1, 0], sizes = [1, 128], strides = [1, 1]} : vector<5x128xf32> to vector<1x128xf32>
    %189 = vector.broadcast %188 : vector<1x128xf32> to vector<5x128xf32>
    %190 = vector.broadcast %9 : vector<5x1xf32> to vector<5x128xf32>
    %191 = arith.addf %189, %190 : vector<5x128xf32>
    %192 = arith.cmpf ogt, %191, %187 : vector<5x128xf32>
    %193 = arith.select %192, %191, %187 : vector<5x128xi1>, vector<5x128xf32>
    %c1_i32_58 = arith.constant 1 : i32
    %194 = vector.broadcast %c1_i32_58 : i32 to vector<5x128xi32>
    %195 = arith.select %192, %194, %13 : vector<5x128xi1>, vector<5x128xi32>
    %196 = vector.extract_strided_slice %176 {offsets = [2, 0], sizes = [1, 128], strides = [1, 1]} : vector<5x128xf32> to vector<1x128xf32>
    %197 = vector.broadcast %196 : vector<1x128xf32> to vector<5x128xf32>
    %198 = vector.broadcast %10 : vector<5x1xf32> to vector<5x128xf32>
    %199 = arith.addf %197, %198 : vector<5x128xf32>
    %200 = arith.cmpf ogt, %199, %193 : vector<5x128xf32>
    %201 = arith.select %200, %199, %193 : vector<5x128xi1>, vector<5x128xf32>
    %c2_i32_59 = arith.constant 2 : i32
    %202 = vector.broadcast %c2_i32_59 : i32 to vector<5x128xi32>
    %203 = arith.select %200, %202, %195 : vector<5x128xi1>, vector<5x128xi32>
    %204 = vector.extract_strided_slice %176 {offsets = [3, 0], sizes = [1, 128], strides = [1, 1]} : vector<5x128xf32> to vector<1x128xf32>
    %205 = vector.broadcast %204 : vector<1x128xf32> to vector<5x128xf32>
    %206 = vector.broadcast %11 : vector<5x1xf32> to vector<5x128xf32>
    %207 = arith.addf %205, %206 : vector<5x128xf32>
    %208 = arith.cmpf ogt, %207, %201 : vector<5x128xf32>
    %209 = arith.select %208, %207, %201 : vector<5x128xi1>, vector<5x128xf32>
    %c3_i32_60 = arith.constant 3 : i32
    %210 = vector.broadcast %c3_i32_60 : i32 to vector<5x128xi32>
    %211 = arith.select %208, %210, %203 : vector<5x128xi1>, vector<5x128xi32>
    %212 = vector.extract_strided_slice %176 {offsets = [4, 0], sizes = [1, 128], strides = [1, 1]} : vector<5x128xf32> to vector<1x128xf32>
    %213 = vector.broadcast %212 : vector<1x128xf32> to vector<5x128xf32>
    %214 = vector.broadcast %12 : vector<5x1xf32> to vector<5x128xf32>
    %215 = arith.addf %213, %214 : vector<5x128xf32>
    %216 = arith.cmpf ogt, %215, %209 : vector<5x128xf32>
    %217 = arith.select %216, %215, %209 : vector<5x128xi1>, vector<5x128xf32>
    %c4_i32_61 = arith.constant 4 : i32
    %218 = vector.broadcast %c4_i32_61 : i32 to vector<5x128xi32>
    %219 = arith.select %216, %218, %211 : vector<5x128xi1>, vector<5x128xi32>
    %c4_62 = arith.constant 4 : index
    %c0_63 = arith.constant 0 : index
    %c0_64 = arith.constant 0 : index
    %220 = vector.load %arg8[%c4_62, %c0_63, %c0_64] : memref<8x5x128xi32, #tpu.memory_space<vmem>>, vector<1x5x128xi32>
    %221 = vector.shape_cast %220 : vector<1x5x128xi32> to vector<5x128xi32>
    %222 = vector.shape_cast %219 : vector<5x128xi32> to vector<1x5x128xi32>
    tpu.vector_store %arg8[%c4_62, %c0_63, %c0_64], %222 {strides = array<i32>} : memref<8x5x128xi32, #tpu.memory_space<vmem>>, vector<1x5x128xi32>,
    %c4_i32_65 = arith.constant 4 : i32
    %223 = vector.broadcast %c4_i32_65 : i32 to vector<1x128xi32>
    %224 = arith.cmpi sgt, %4, %223 : vector<1x128xi32>
    %225 = arith.addf %217, %180 : vector<5x128xf32>
    %226 = vector.shape_cast %224 : vector<1x128xi1> to vector<1x128xi1>
    %227 = vector.broadcast %226 : vector<1x128xi1> to vector<5x128xi1>
    %228 = arith.select %227, %225, %176 : vector<5x128xi1>, vector<5x128xf32>
    %c5 = arith.constant 5 : index
    %c0_66 = arith.constant 0 : index
    %c0_67 = arith.constant 0 : index
    %229 = vector.load %arg2[%c5, %c0_66, %c0_67] : memref<8x32x128xbf16, #tpu.memory_space<vmem>>, vector<1x32x128xbf16>
    %230 = vector.shape_cast %229 : vector<1x32x128xbf16> to vector<32x128xbf16>
    %cst_68 = arith.constant dense<0.000000e+00> : vector<5x128xf32>
    %231 = tpu.matmul %0, %230, %cst_68 {dimension_numbers = #tpu.dot_dimension_numbers<[1], [0], [0], [1], [0, 0, 1, 1], [], []>} : vector<5x32xbf16>, vector<32x128xbf16>, vector<5x128xf32> -> vector<5x128xf32>
    %232 = arith.addf %231, %3 : vector<5x128xf32>
    %c5_69 = arith.constant 5 : index
    %c0_70 = arith.constant 0 : index
    %c0_71 = arith.constant 0 : index
    %233 = vector.load %arg6[%c5_69, %c0_70, %c0_71] : memref<8x5x128xf32, #tpu.memory_space<vmem>>, vector<1x5x128xf32>
    %234 = vector.shape_cast %233 : vector<1x5x128xf32> to vector<5x128xf32>
    %235 = vector.shape_cast %232 : vector<5x128xf32> to vector<1x5x128xf32>
    tpu.vector_store %arg6[%c5_69, %c0_70, %c0_71], %235 {strides = array<i32>} : memref<8x5x128xf32, #tpu.memory_space<vmem>>, vector<1x5x128xf32>,
    %236 = vector.extract_strided_slice %228 {offsets = [0, 0], sizes = [1, 128], strides = [1, 1]} : vector<5x128xf32> to vector<1x128xf32>
    %237 = vector.broadcast %236 : vector<1x128xf32> to vector<5x128xf32>
    %238 = vector.broadcast %8 : vector<5x1xf32> to vector<5x128xf32>
    %239 = arith.addf %237, %238 : vector<5x128xf32>
    %240 = vector.extract_strided_slice %228 {offsets = [1, 0], sizes = [1, 128], strides = [1, 1]} : vector<5x128xf32> to vector<1x128xf32>
    %241 = vector.broadcast %240 : vector<1x128xf32> to vector<5x128xf32>
    %242 = vector.broadcast %9 : vector<5x1xf32> to vector<5x128xf32>
    %243 = arith.addf %241, %242 : vector<5x128xf32>
    %244 = arith.cmpf ogt, %243, %239 : vector<5x128xf32>
    %245 = arith.select %244, %243, %239 : vector<5x128xi1>, vector<5x128xf32>
    %c1_i32_72 = arith.constant 1 : i32
    %246 = vector.broadcast %c1_i32_72 : i32 to vector<5x128xi32>
    %247 = arith.select %244, %246, %13 : vector<5x128xi1>, vector<5x128xi32>
    %248 = vector.extract_strided_slice %228 {offsets = [2, 0], sizes = [1, 128], strides = [1, 1]} : vector<5x128xf32> to vector<1x128xf32>
    %249 = vector.broadcast %248 : vector<1x128xf32> to vector<5x128xf32>
    %250 = vector.broadcast %10 : vector<5x1xf32> to vector<5x128xf32>
    %251 = arith.addf %249, %250 : vector<5x128xf32>
    %252 = arith.cmpf ogt, %251, %245 : vector<5x128xf32>
    %253 = arith.select %252, %251, %245 : vector<5x128xi1>, vector<5x128xf32>
    %c2_i32_73 = arith.constant 2 : i32
    %254 = vector.broadcast %c2_i32_73 : i32 to vector<5x128xi32>
    %255 = arith.select %252, %254, %247 : vector<5x128xi1>, vector<5x128xi32>
    %256 = vector.extract_strided_slice %228 {offsets = [3, 0], sizes = [1, 128], strides = [1, 1]} : vector<5x128xf32> to vector<1x128xf32>
    %257 = vector.broadcast %256 : vector<1x128xf32> to vector<5x128xf32>
    %258 = vector.broadcast %11 : vector<5x1xf32> to vector<5x128xf32>
    %259 = arith.addf %257, %258 : vector<5x128xf32>
    %260 = arith.cmpf ogt, %259, %253 : vector<5x128xf32>
    %261 = arith.select %260, %259, %253 : vector<5x128xi1>, vector<5x128xf32>
    %c3_i32_74 = arith.constant 3 : i32
    %262 = vector.broadcast %c3_i32_74 : i32 to vector<5x128xi32>
    %263 = arith.select %260, %262, %255 : vector<5x128xi1>, vector<5x128xi32>
    %264 = vector.extract_strided_slice %228 {offsets = [4, 0], sizes = [1, 128], strides = [1, 1]} : vector<5x128xf32> to vector<1x128xf32>
    %265 = vector.broadcast %264 : vector<1x128xf32> to vector<5x128xf32>
    %266 = vector.broadcast %12 : vector<5x1xf32> to vector<5x128xf32>
    %267 = arith.addf %265, %266 : vector<5x128xf32>
    %268 = arith.cmpf ogt, %267, %261 : vector<5x128xf32>
    %269 = arith.select %268, %267, %261 : vector<5x128xi1>, vector<5x128xf32>
    %c4_i32_75 = arith.constant 4 : i32
    %270 = vector.broadcast %c4_i32_75 : i32 to vector<5x128xi32>
    %271 = arith.select %268, %270, %263 : vector<5x128xi1>, vector<5x128xi32>
    %c5_76 = arith.constant 5 : index
    %c0_77 = arith.constant 0 : index
    %c0_78 = arith.constant 0 : index
    %272 = vector.load %arg8[%c5_76, %c0_77, %c0_78] : memref<8x5x128xi32, #tpu.memory_space<vmem>>, vector<1x5x128xi32>
    %273 = vector.shape_cast %272 : vector<1x5x128xi32> to vector<5x128xi32>
    %274 = vector.shape_cast %271 : vector<5x128xi32> to vector<1x5x128xi32>
    tpu.vector_store %arg8[%c5_76, %c0_77, %c0_78], %274 {strides = array<i32>} : memref<8x5x128xi32, #tpu.memory_space<vmem>>, vector<1x5x128xi32>,
    %c5_i32 = arith.constant 5 : i32
    %275 = vector.broadcast %c5_i32 : i32 to vector<1x128xi32>
    %276 = arith.cmpi sgt, %4, %275 : vector<1x128xi32>
    %277 = arith.addf %269, %232 : vector<5x128xf32>
    %278 = vector.shape_cast %276 : vector<1x128xi1> to vector<1x128xi1>
    %279 = vector.broadcast %278 : vector<1x128xi1> to vector<5x128xi1>
    %280 = arith.select %279, %277, %228 : vector<5x128xi1>, vector<5x128xf32>
    %c6 = arith.constant 6 : index
    %c0_79 = arith.constant 0 : index
    %c0_80 = arith.constant 0 : index
    %281 = vector.load %arg2[%c6, %c0_79, %c0_80] : memref<8x32x128xbf16, #tpu.memory_space<vmem>>, vector<1x32x128xbf16>
    %282 = vector.shape_cast %281 : vector<1x32x128xbf16> to vector<32x128xbf16>
    %cst_81 = arith.constant dense<0.000000e+00> : vector<5x128xf32>
    %283 = tpu.matmul %0, %282, %cst_81 {dimension_numbers = #tpu.dot_dimension_numbers<[1], [0], [0], [1], [0, 0, 1, 1], [], []>} : vector<5x32xbf16>, vector<32x128xbf16>, vector<5x128xf32> -> vector<5x128xf32>
    %284 = arith.addf %283, %3 : vector<5x128xf32>
    %c6_82 = arith.constant 6 : index
    %c0_83 = arith.constant 0 : index
    %c0_84 = arith.constant 0 : index
    %285 = vector.load %arg6[%c6_82, %c0_83, %c0_84] : memref<8x5x128xf32, #tpu.memory_space<vmem>>, vector<1x5x128xf32>
    %286 = vector.shape_cast %285 : vector<1x5x128xf32> to vector<5x128xf32>
    %287 = vector.shape_cast %284 : vector<5x128xf32> to vector<1x5x128xf32>
    tpu.vector_store %arg6[%c6_82, %c0_83, %c0_84], %287 {strides = array<i32>} : memref<8x5x128xf32, #tpu.memory_space<vmem>>, vector<1x5x128xf32>,
    %288 = vector.extract_strided_slice %280 {offsets = [0, 0], sizes = [1, 128], strides = [1, 1]} : vector<5x128xf32> to vector<1x128xf32>
    %289 = vector.broadcast %288 : vector<1x128xf32> to vector<5x128xf32>
    %290 = vector.broadcast %8 : vector<5x1xf32> to vector<5x128xf32>
    %291 = arith.addf %289, %290 : vector<5x128xf32>
    %292 = vector.extract_strided_slice %280 {offsets = [1, 0], sizes = [1, 128], strides = [1, 1]} : vector<5x128xf32> to vector<1x128xf32>
    %293 = vector.broadcast %292 : vector<1x128xf32> to vector<5x128xf32>
    %294 = vector.broadcast %9 : vector<5x1xf32> to vector<5x128xf32>
    %295 = arith.addf %293, %294 : vector<5x128xf32>
    %296 = arith.cmpf ogt, %295, %291 : vector<5x128xf32>
    %297 = arith.select %296, %295, %291 : vector<5x128xi1>, vector<5x128xf32>
    %c1_i32_85 = arith.constant 1 : i32
    %298 = vector.broadcast %c1_i32_85 : i32 to vector<5x128xi32>
    %299 = arith.select %296, %298, %13 : vector<5x128xi1>, vector<5x128xi32>
    %300 = vector.extract_strided_slice %280 {offsets = [2, 0], sizes = [1, 128], strides = [1, 1]} : vector<5x128xf32> to vector<1x128xf32>
    %301 = vector.broadcast %300 : vector<1x128xf32> to vector<5x128xf32>
    %302 = vector.broadcast %10 : vector<5x1xf32> to vector<5x128xf32>
    %303 = arith.addf %301, %302 : vector<5x128xf32>
    %304 = arith.cmpf ogt, %303, %297 : vector<5x128xf32>
    %305 = arith.select %304, %303, %297 : vector<5x128xi1>, vector<5x128xf32>
    %c2_i32_86 = arith.constant 2 : i32
    %306 = vector.broadcast %c2_i32_86 : i32 to vector<5x128xi32>
    %307 = arith.select %304, %306, %299 : vector<5x128xi1>, vector<5x128xi32>
    %308 = vector.extract_strided_slice %280 {offsets = [3, 0], sizes = [1, 128], strides = [1, 1]} : vector<5x128xf32> to vector<1x128xf32>
    %309 = vector.broadcast %308 : vector<1x128xf32> to vector<5x128xf32>
    %310 = vector.broadcast %11 : vector<5x1xf32> to vector<5x128xf32>
    %311 = arith.addf %309, %310 : vector<5x128xf32>
    %312 = arith.cmpf ogt, %311, %305 : vector<5x128xf32>
    %313 = arith.select %312, %311, %305 : vector<5x128xi1>, vector<5x128xf32>
    %c3_i32_87 = arith.constant 3 : i32
    %314 = vector.broadcast %c3_i32_87 : i32 to vector<5x128xi32>
    %315 = arith.select %312, %314, %307 : vector<5x128xi1>, vector<5x128xi32>
    %316 = vector.extract_strided_slice %280 {offsets = [4, 0], sizes = [1, 128], strides = [1, 1]} : vector<5x128xf32> to vector<1x128xf32>
    %317 = vector.broadcast %316 : vector<1x128xf32> to vector<5x128xf32>
    %318 = vector.broadcast %12 : vector<5x1xf32> to vector<5x128xf32>
    %319 = arith.addf %317, %318 : vector<5x128xf32>
    %320 = arith.cmpf ogt, %319, %313 : vector<5x128xf32>
    %321 = arith.select %320, %319, %313 : vector<5x128xi1>, vector<5x128xf32>
    %c4_i32_88 = arith.constant 4 : i32
    %322 = vector.broadcast %c4_i32_88 : i32 to vector<5x128xi32>
    %323 = arith.select %320, %322, %315 : vector<5x128xi1>, vector<5x128xi32>
    %c6_89 = arith.constant 6 : index
    %c0_90 = arith.constant 0 : index
    %c0_91 = arith.constant 0 : index
    %324 = vector.load %arg8[%c6_89, %c0_90, %c0_91] : memref<8x5x128xi32, #tpu.memory_space<vmem>>, vector<1x5x128xi32>
    %325 = vector.shape_cast %324 : vector<1x5x128xi32> to vector<5x128xi32>
    %326 = vector.shape_cast %323 : vector<5x128xi32> to vector<1x5x128xi32>
    tpu.vector_store %arg8[%c6_89, %c0_90, %c0_91], %326 {strides = array<i32>} : memref<8x5x128xi32, #tpu.memory_space<vmem>>, vector<1x5x128xi32>,
    %c6_i32 = arith.constant 6 : i32
    %327 = vector.broadcast %c6_i32 : i32 to vector<1x128xi32>
    %328 = arith.cmpi sgt, %4, %327 : vector<1x128xi32>
    %329 = arith.addf %321, %284 : vector<5x128xf32>
    %330 = vector.shape_cast %328 : vector<1x128xi1> to vector<1x128xi1>
    %331 = vector.broadcast %330 : vector<1x128xi1> to vector<5x128xi1>
    %332 = arith.select %331, %329, %280 : vector<5x128xi1>, vector<5x128xf32>
    %c7 = arith.constant 7 : index
    %c0_92 = arith.constant 0 : index
    %c0_93 = arith.constant 0 : index
    %333 = vector.load %arg2[%c7, %c0_92, %c0_93] : memref<8x32x128xbf16, #tpu.memory_space<vmem>>, vector<1x32x128xbf16>
    %334 = vector.shape_cast %333 : vector<1x32x128xbf16> to vector<32x128xbf16>
    %cst_94 = arith.constant dense<0.000000e+00> : vector<5x128xf32>
    %335 = tpu.matmul %0, %334, %cst_94 {dimension_numbers = #tpu.dot_dimension_numbers<[1], [0], [0], [1], [0, 0, 1, 1], [], []>} : vector<5x32xbf16>, vector<32x128xbf16>, vector<5x128xf32> -> vector<5x128xf32>
    %336 = arith.addf %335, %3 : vector<5x128xf32>
    %c7_95 = arith.constant 7 : index
    %c0_96 = arith.constant 0 : index
    %c0_97 = arith.constant 0 : index
    %337 = vector.load %arg6[%c7_95, %c0_96, %c0_97] : memref<8x5x128xf32, #tpu.memory_space<vmem>>, vector<1x5x128xf32>
    %338 = vector.shape_cast %337 : vector<1x5x128xf32> to vector<5x128xf32>
    %339 = vector.shape_cast %336 : vector<5x128xf32> to vector<1x5x128xf32>
    tpu.vector_store %arg6[%c7_95, %c0_96, %c0_97], %339 {strides = array<i32>} : memref<8x5x128xf32, #tpu.memory_space<vmem>>, vector<1x5x128xf32>,
    %340 = vector.extract_strided_slice %332 {offsets = [0, 0], sizes = [1, 128], strides = [1, 1]} : vector<5x128xf32> to vector<1x128xf32>
    %341 = vector.broadcast %340 : vector<1x128xf32> to vector<5x128xf32>
    %342 = vector.broadcast %8 : vector<5x1xf32> to vector<5x128xf32>
    %343 = arith.addf %341, %342 : vector<5x128xf32>
    %344 = vector.extract_strided_slice %332 {offsets = [1, 0], sizes = [1, 128], strides = [1, 1]} : vector<5x128xf32> to vector<1x128xf32>
    %345 = vector.broadcast %344 : vector<1x128xf32> to vector<5x128xf32>
    %346 = vector.broadcast %9 : vector<5x1xf32> to vector<5x128xf32>
    %347 = arith.addf %345, %346 : vector<5x128xf32>
    %348 = arith.cmpf ogt, %347, %343 : vector<5x128xf32>
    %349 = arith.select %348, %347, %343 : vector<5x128xi1>, vector<5x128xf32>
    %c1_i32_98 = arith.constant 1 : i32
    %350 = vector.broadcast %c1_i32_98 : i32 to vector<5x128xi32>
    %351 = arith.select %348, %350, %13 : vector<5x128xi1>, vector<5x128xi32>
    %352 = vector.extract_strided_slice %332 {offsets = [2, 0], sizes = [1, 128], strides = [1, 1]} : vector<5x128xf32> to vector<1x128xf32>
    %353 = vector.broadcast %352 : vector<1x128xf32> to vector<5x128xf32>
    %354 = vector.broadcast %10 : vector<5x1xf32> to vector<5x128xf32>
    %355 = arith.addf %353, %354 : vector<5x128xf32>
    %356 = arith.cmpf ogt, %355, %349 : vector<5x128xf32>
    %357 = arith.select %356, %355, %349 : vector<5x128xi1>, vector<5x128xf32>
    %c2_i32_99 = arith.constant 2 : i32
    %358 = vector.broadcast %c2_i32_99 : i32 to vector<5x128xi32>
    %359 = arith.select %356, %358, %351 : vector<5x128xi1>, vector<5x128xi32>
    %360 = vector.extract_strided_slice %332 {offsets = [3, 0], sizes = [1, 128], strides = [1, 1]} : vector<5x128xf32> to vector<1x128xf32>
    %361 = vector.broadcast %360 : vector<1x128xf32> to vector<5x128xf32>
    %362 = vector.broadcast %11 : vector<5x1xf32> to vector<5x128xf32>
    %363 = arith.addf %361, %362 : vector<5x128xf32>
    %364 = arith.cmpf ogt, %363, %357 : vector<5x128xf32>
    %365 = arith.select %364, %363, %357 : vector<5x128xi1>, vector<5x128xf32>
    %c3_i32_100 = arith.constant 3 : i32
    %366 = vector.broadcast %c3_i32_100 : i32 to vector<5x128xi32>
    %367 = arith.select %364, %366, %359 : vector<5x128xi1>, vector<5x128xi32>
    %368 = vector.extract_strided_slice %332 {offsets = [4, 0], sizes = [1, 128], strides = [1, 1]} : vector<5x128xf32> to vector<1x128xf32>
    %369 = vector.broadcast %368 : vector<1x128xf32> to vector<5x128xf32>
    %370 = vector.broadcast %12 : vector<5x1xf32> to vector<5x128xf32>
    %371 = arith.addf %369, %370 : vector<5x128xf32>
    %372 = arith.cmpf ogt, %371, %365 : vector<5x128xf32>
    %373 = arith.select %372, %371, %365 : vector<5x128xi1>, vector<5x128xf32>
    %c4_i32_101 = arith.constant 4 : i32
    %374 = vector.broadcast %c4_i32_101 : i32 to vector<5x128xi32>
    %375 = arith.select %372, %374, %367 : vector<5x128xi1>, vector<5x128xi32>
    %c7_102 = arith.constant 7 : index
    %c0_103 = arith.constant 0 : index
    %c0_104 = arith.constant 0 : index
    %376 = vector.load %arg8[%c7_102, %c0_103, %c0_104] : memref<8x5x128xi32, #tpu.memory_space<vmem>>, vector<1x5x128xi32>
    %377 = vector.shape_cast %376 : vector<1x5x128xi32> to vector<5x128xi32>
    %378 = vector.shape_cast %375 : vector<5x128xi32> to vector<1x5x128xi32>
    tpu.vector_store %arg8[%c7_102, %c0_103, %c0_104], %378 {strides = array<i32>} : memref<8x5x128xi32, #tpu.memory_space<vmem>>, vector<1x5x128xi32>,
    %c7_i32 = arith.constant 7 : i32
    %379 = vector.broadcast %c7_i32 : i32 to vector<1x128xi32>
    %380 = arith.cmpi sgt, %4, %379 : vector<1x128xi32>
    %381 = arith.addf %373, %336 : vector<5x128xf32>
    %382 = vector.shape_cast %380 : vector<1x128xi1> to vector<1x128xi1>
    %383 = vector.broadcast %382 : vector<1x128xi1> to vector<5x128xi1>
    %384 = arith.select %383, %381, %332 : vector<5x128xi1>, vector<5x128xf32>
    %385 = vector.extract_strided_slice %384 {offsets = [0, 0], sizes = [1, 128], strides = [1, 1]} : vector<5x128xf32> to vector<1x128xf32>
    %c0_i32_105 = arith.constant 0 : i32
    %386 = vector.broadcast %c0_i32_105 : i32 to vector<1x128xi32>
    %387 = vector.extract_strided_slice %384 {offsets = [1, 0], sizes = [1, 128], strides = [1, 1]} : vector<5x128xf32> to vector<1x128xf32>
    %388 = arith.cmpf ogt, %387, %385 : vector<1x128xf32>
    %389 = arith.select %388, %387, %385 : vector<1x128xi1>, vector<1x128xf32>
    %c1_i32_106 = arith.constant 1 : i32
    %390 = vector.broadcast %c1_i32_106 : i32 to vector<1x128xi32>
    %391 = arith.select %388, %390, %386 : vector<1x128xi1>, vector<1x128xi32>
    %392 = vector.extract_strided_slice %384 {offsets = [2, 0], sizes = [1, 128], strides = [1, 1]} : vector<5x128xf32> to vector<1x128xf32>
    %393 = arith.cmpf ogt, %392, %389 : vector<1x128xf32>
    %394 = arith.select %393, %392, %389 : vector<1x128xi1>, vector<1x128xf32>
    %c2_i32_107 = arith.constant 2 : i32
    %395 = vector.broadcast %c2_i32_107 : i32 to vector<1x128xi32>
    %396 = arith.select %393, %395, %391 : vector<1x128xi1>, vector<1x128xi32>
    %397 = vector.extract_strided_slice %384 {offsets = [3, 0], sizes = [1, 128], strides = [1, 1]} : vector<5x128xf32> to vector<1x128xf32>
    %398 = arith.cmpf ogt, %397, %394 : vector<1x128xf32>
    %399 = arith.select %398, %397, %394 : vector<1x128xi1>, vector<1x128xf32>
    %c3_i32_108 = arith.constant 3 : i32
    %400 = vector.broadcast %c3_i32_108 : i32 to vector<1x128xi32>
    %401 = arith.select %398, %400, %396 : vector<1x128xi1>, vector<1x128xi32>
    %402 = vector.extract_strided_slice %384 {offsets = [4, 0], sizes = [1, 128], strides = [1, 1]} : vector<5x128xf32> to vector<1x128xf32>
    %403 = arith.cmpf ogt, %402, %399 : vector<1x128xf32>
    %c4_i32_109 = arith.constant 4 : i32
    %404 = vector.broadcast %c4_i32_109 : i32 to vector<1x128xi32>
    %405 = arith.select %403, %404, %401 : vector<1x128xi1>, vector<1x128xi32>
    %c7_110 = arith.constant 7 : index
    %c0_111 = arith.constant 0 : index
    %c0_112 = arith.constant 0 : index
    %406 = vector.load %arg8[%c7_110, %c0_111, %c0_112] : memref<8x5x128xi32, #tpu.memory_space<vmem>>, vector<1x5x128xi32>
    %407 = vector.shape_cast %406 : vector<1x5x128xi32> to vector<5x128xi32>
    %408 = vector.extract_strided_slice %407 {offsets = [0, 0], sizes = [1, 128], strides = [1, 1]} : vector<5x128xi32> to vector<1x128xi32>
    %c1_i32_113 = arith.constant 1 : i32
    %409 = vector.broadcast %c1_i32_113 : i32 to vector<1x128xi32>
    %410 = arith.cmpi eq, %405, %409 : vector<1x128xi32>
    %411 = vector.extract_strided_slice %407 {offsets = [1, 0], sizes = [1, 128], strides = [1, 1]} : vector<5x128xi32> to vector<1x128xi32>
    %412 = arith.select %410, %411, %408 : vector<1x128xi1>, vector<1x128xi32>
    %c2_i32_114 = arith.constant 2 : i32
    %413 = vector.broadcast %c2_i32_114 : i32 to vector<1x128xi32>
    %414 = arith.cmpi eq, %405, %413 : vector<1x128xi32>
    %415 = vector.extract_strided_slice %407 {offsets = [2, 0], sizes = [1, 128], strides = [1, 1]} : vector<5x128xi32> to vector<1x128xi32>
    %416 = arith.select %414, %415, %412 : vector<1x128xi1>, vector<1x128xi32>
    %c3_i32_115 = arith.constant 3 : i32
    %417 = vector.broadcast %c3_i32_115 : i32 to vector<1x128xi32>
    %418 = arith.cmpi eq, %405, %417 : vector<1x128xi32>
    %419 = vector.extract_strided_slice %407 {offsets = [3, 0], sizes = [1, 128], strides = [1, 1]} : vector<5x128xi32> to vector<1x128xi32>
    %420 = arith.select %418, %419, %416 : vector<1x128xi1>, vector<1x128xi32>
    %c4_i32_116 = arith.constant 4 : i32
    %421 = vector.broadcast %c4_i32_116 : i32 to vector<1x128xi32>
    %422 = arith.cmpi eq, %405, %421 : vector<1x128xi32>
    %423 = vector.extract_strided_slice %407 {offsets = [4, 0], sizes = [1, 128], strides = [1, 1]} : vector<5x128xi32> to vector<1x128xi32>
    %424 = arith.select %422, %423, %420 : vector<1x128xi1>, vector<1x128xi32>
    %c7_i32_117 = arith.constant 7 : i32
    %425 = vector.broadcast %c7_i32_117 : i32 to vector<1x128xi32>
    %426 = arith.cmpi eq, %6, %425 : vector<1x128xi32>
    %427 = arith.select %426, %405, %424 : vector<1x128xi1>, vector<1x128xi32>
    %c7_i32_118 = arith.constant 7 : i32
    %428 = vector.broadcast %c7_i32_118 : i32 to vector<1x128xi32>
    %429 = arith.cmpi sge, %6, %428 : vector<1x128xi32>
    %c0_i32_119 = arith.constant 0 : i32
    %430 = vector.broadcast %c0_i32_119 : i32 to vector<1x128xi32>
    %431 = arith.select %429, %427, %430 : vector<1x128xi1>, vector<1x128xi32>
    %c7_120 = arith.constant 7 : index
    %c0_121 = arith.constant 0 : index
    %432 = vector.load %arg7[%c7_120, %c0_121] : memref<8x128xi32, #tpu.memory_space<vmem>>, vector<1x128xi32>
    tpu.vector_store %arg7[%c7_120, %c0_121], %431 {strides = array<i32>} : memref<8x128xi32, #tpu.memory_space<vmem>>, vector<1x128xi32>,
    %c7_122 = arith.constant 7 : index
    %c0_123 = arith.constant 0 : index
    %c0_124 = arith.constant 0 : index
    %433 = vector.load %arg8[%c7_122, %c0_123, %c0_124] : memref<8x5x128xi32, #tpu.memory_space<vmem>>, vector<1x5x128xi32>
    %434 = vector.shape_cast %433 : vector<1x5x128xi32> to vector<5x128xi32>
    %435 = vector.extract_strided_slice %434 {offsets = [0, 0], sizes = [1, 128], strides = [1, 1]} : vector<5x128xi32> to vector<1x128xi32>
    %c1_i32_125 = arith.constant 1 : i32
    %436 = vector.broadcast %c1_i32_125 : i32 to vector<1x128xi32>
    %437 = arith.cmpi eq, %427, %436 : vector<1x128xi32>
    %438 = vector.extract_strided_slice %434 {offsets = [1, 0], sizes = [1, 128], strides = [1, 1]} : vector<5x128xi32> to vector<1x128xi32>
    %439 = arith.select %437, %438, %435 : vector<1x128xi1>, vector<1x128xi32>
    %c2_i32_126 = arith.constant 2 : i32
    %440 = vector.broadcast %c2_i32_126 : i32 to vector<1x128xi32>
    %441 = arith.cmpi eq, %427, %440 : vector<1x128xi32>
    %442 = vector.extract_strided_slice %434 {offsets = [2, 0], sizes = [1, 128], strides = [1, 1]} : vector<5x128xi32> to vector<1x128xi32>
    %443 = arith.select %441, %442, %439 : vector<1x128xi1>, vector<1x128xi32>
    %c3_i32_127 = arith.constant 3 : i32
    %444 = vector.broadcast %c3_i32_127 : i32 to vector<1x128xi32>
    %445 = arith.cmpi eq, %427, %444 : vector<1x128xi32>
    %446 = vector.extract_strided_slice %434 {offsets = [3, 0], sizes = [1, 128], strides = [1, 1]} : vector<5x128xi32> to vector<1x128xi32>
    %447 = arith.select %445, %446, %443 : vector<1x128xi1>, vector<1x128xi32>
    %c4_i32_128 = arith.constant 4 : i32
    %448 = vector.broadcast %c4_i32_128 : i32 to vector<1x128xi32>
    %449 = arith.cmpi eq, %427, %448 : vector<1x128xi32>
    %450 = vector.extract_strided_slice %434 {offsets = [4, 0], sizes = [1, 128], strides = [1, 1]} : vector<5x128xi32> to vector<1x128xi32>
    %451 = arith.select %449, %450, %447 : vector<1x128xi1>, vector<1x128xi32>
    %c6_i32_129 = arith.constant 6 : i32
    %452 = vector.broadcast %c6_i32_129 : i32 to vector<1x128xi32>
    %453 = arith.cmpi eq, %6, %452 : vector<1x128xi32>
    %454 = arith.select %453, %405, %451 : vector<1x128xi1>, vector<1x128xi32>
    %c6_i32_130 = arith.constant 6 : i32
    %455 = vector.broadcast %c6_i32_130 : i32 to vector<1x128xi32>
    %456 = arith.cmpi sge, %6, %455 : vector<1x128xi32>
    %c0_i32_131 = arith.constant 0 : i32
    %457 = vector.broadcast %c0_i32_131 : i32 to vector<1x128xi32>
    %458 = arith.select %456, %454, %457 : vector<1x128xi1>, vector<1x128xi32>
    %c6_132 = arith.constant 6 : index
    %c0_133 = arith.constant 0 : index
    %459 = vector.load %arg7[%c6_132, %c0_133] : memref<8x128xi32, #tpu.memory_space<vmem>>, vector<1x128xi32>
    tpu.vector_store %arg7[%c6_132, %c0_133], %458 {strides = array<i32>} : memref<8x128xi32, #tpu.memory_space<vmem>>, vector<1x128xi32>,
    %c6_134 = arith.constant 6 : index
    %c0_135 = arith.constant 0 : index
    %c0_136 = arith.constant 0 : index
    %460 = vector.load %arg8[%c6_134, %c0_135, %c0_136] : memref<8x5x128xi32, #tpu.memory_space<vmem>>, vector<1x5x128xi32>
    %461 = vector.shape_cast %460 : vector<1x5x128xi32> to vector<5x128xi32>
    %462 = vector.extract_strided_slice %461 {offsets = [0, 0], sizes = [1, 128], strides = [1, 1]} : vector<5x128xi32> to vector<1x128xi32>
    %c1_i32_137 = arith.constant 1 : i32
    %463 = vector.broadcast %c1_i32_137 : i32 to vector<1x128xi32>
    %464 = arith.cmpi eq, %454, %463 : vector<1x128xi32>
    %465 = vector.extract_strided_slice %461 {offsets = [1, 0], sizes = [1, 128], strides = [1, 1]} : vector<5x128xi32> to vector<1x128xi32>
    %466 = arith.select %464, %465, %462 : vector<1x128xi1>, vector<1x128xi32>
    %c2_i32_138 = arith.constant 2 : i32
    %467 = vector.broadcast %c2_i32_138 : i32 to vector<1x128xi32>
    %468 = arith.cmpi eq, %454, %467 : vector<1x128xi32>
    %469 = vector.extract_strided_slice %461 {offsets = [2, 0], sizes = [1, 128], strides = [1, 1]} : vector<5x128xi32> to vector<1x128xi32>
    %470 = arith.select %468, %469, %466 : vector<1x128xi1>, vector<1x128xi32>
    %c3_i32_139 = arith.constant 3 : i32
    %471 = vector.broadcast %c3_i32_139 : i32 to vector<1x128xi32>
    %472 = arith.cmpi eq, %454, %471 : vector<1x128xi32>
    %473 = vector.extract_strided_slice %461 {offsets = [3, 0], sizes = [1, 128], strides = [1, 1]} : vector<5x128xi32> to vector<1x128xi32>
    %474 = arith.select %472, %473, %470 : vector<1x128xi1>, vector<1x128xi32>
    %c4_i32_140 = arith.constant 4 : i32
    %475 = vector.broadcast %c4_i32_140 : i32 to vector<1x128xi32>
    %476 = arith.cmpi eq, %454, %475 : vector<1x128xi32>
    %477 = vector.extract_strided_slice %461 {offsets = [4, 0], sizes = [1, 128], strides = [1, 1]} : vector<5x128xi32> to vector<1x128xi32>
    %478 = arith.select %476, %477, %474 : vector<1x128xi1>, vector<1x128xi32>
    %c5_i32_141 = arith.constant 5 : i32
    %479 = vector.broadcast %c5_i32_141 : i32 to vector<1x128xi32>
    %480 = arith.cmpi eq, %6, %479 : vector<1x128xi32>
    %481 = arith.select %480, %405, %478 : vector<1x128xi1>, vector<1x128xi32>
    %c5_i32_142 = arith.constant 5 : i32
    %482 = vector.broadcast %c5_i32_142 : i32 to vector<1x128xi32>
    %483 = arith.cmpi sge, %6, %482 : vector<1x128xi32>
    %c0_i32_143 = arith.constant 0 : i32
    %484 = vector.broadcast %c0_i32_143 : i32 to vector<1x128xi32>
    %485 = arith.select %483, %481, %484 : vector<1x128xi1>, vector<1x128xi32>
    %c5_144 = arith.constant 5 : index
    %c0_145 = arith.constant 0 : index
    %486 = vector.load %arg7[%c5_144, %c0_145] : memref<8x128xi32, #tpu.memory_space<vmem>>, vector<1x128xi32>
    tpu.vector_store %arg7[%c5_144, %c0_145], %485 {strides = array<i32>} : memref<8x128xi32, #tpu.memory_space<vmem>>, vector<1x128xi32>,
    %c5_146 = arith.constant 5 : index
    %c0_147 = arith.constant 0 : index
    %c0_148 = arith.constant 0 : index
    %487 = vector.load %arg8[%c5_146, %c0_147, %c0_148] : memref<8x5x128xi32, #tpu.memory_space<vmem>>, vector<1x5x128xi32>
    %488 = vector.shape_cast %487 : vector<1x5x128xi32> to vector<5x128xi32>
    %489 = vector.extract_strided_slice %488 {offsets = [0, 0], sizes = [1, 128], strides = [1, 1]} : vector<5x128xi32> to vector<1x128xi32>
    %c1_i32_149 = arith.constant 1 : i32
    %490 = vector.broadcast %c1_i32_149 : i32 to vector<1x128xi32>
    %491 = arith.cmpi eq, %481, %490 : vector<1x128xi32>
    %492 = vector.extract_strided_slice %488 {offsets = [1, 0], sizes = [1, 128], strides = [1, 1]} : vector<5x128xi32> to vector<1x128xi32>
    %493 = arith.select %491, %492, %489 : vector<1x128xi1>, vector<1x128xi32>
    %c2_i32_150 = arith.constant 2 : i32
    %494 = vector.broadcast %c2_i32_150 : i32 to vector<1x128xi32>
    %495 = arith.cmpi eq, %481, %494 : vector<1x128xi32>
    %496 = vector.extract_strided_slice %488 {offsets = [2, 0], sizes = [1, 128], strides = [1, 1]} : vector<5x128xi32> to vector<1x128xi32>
    %497 = arith.select %495, %496, %493 : vector<1x128xi1>, vector<1x128xi32>
    %c3_i32_151 = arith.constant 3 : i32
    %498 = vector.broadcast %c3_i32_151 : i32 to vector<1x128xi32>
    %499 = arith.cmpi eq, %481, %498 : vector<1x128xi32>
    %500 = vector.extract_strided_slice %488 {offsets = [3, 0], sizes = [1, 128], strides = [1, 1]} : vector<5x128xi32> to vector<1x128xi32>
    %501 = arith.select %499, %500, %497 : vector<1x128xi1>, vector<1x128xi32>
    %c4_i32_152 = arith.constant 4 : i32
    %502 = vector.broadcast %c4_i32_152 : i32 to vector<1x128xi32>
    %503 = arith.cmpi eq, %481, %502 : vector<1x128xi32>
    %504 = vector.extract_strided_slice %488 {offsets = [4, 0], sizes = [1, 128], strides = [1, 1]} : vector<5x128xi32> to vector<1x128xi32>
    %505 = arith.select %503, %504, %501 : vector<1x128xi1>, vector<1x128xi32>
    %c4_i32_153 = arith.constant 4 : i32
    %506 = vector.broadcast %c4_i32_153 : i32 to vector<1x128xi32>
    %507 = arith.cmpi eq, %6, %506 : vector<1x128xi32>
    %508 = arith.select %507, %405, %505 : vector<1x128xi1>, vector<1x128xi32>
    %c4_i32_154 = arith.constant 4 : i32
    %509 = vector.broadcast %c4_i32_154 : i32 to vector<1x128xi32>
    %510 = arith.cmpi sge, %6, %509 : vector<1x128xi32>
    %c0_i32_155 = arith.constant 0 : i32
    %511 = vector.broadcast %c0_i32_155 : i32 to vector<1x128xi32>
    %512 = arith.select %510, %508, %511 : vector<1x128xi1>, vector<1x128xi32>
    %c4_156 = arith.constant 4 : index
    %c0_157 = arith.constant 0 : index
    %513 = vector.load %arg7[%c4_156, %c0_157] : memref<8x128xi32, #tpu.memory_space<vmem>>, vector<1x128xi32>
    tpu.vector_store %arg7[%c4_156, %c0_157], %512 {strides = array<i32>} : memref<8x128xi32, #tpu.memory_space<vmem>>, vector<1x128xi32>,
    %c4_158 = arith.constant 4 : index
    %c0_159 = arith.constant 0 : index
    %c0_160 = arith.constant 0 : index
    %514 = vector.load %arg8[%c4_158, %c0_159, %c0_160] : memref<8x5x128xi32, #tpu.memory_space<vmem>>, vector<1x5x128xi32>
    %515 = vector.shape_cast %514 : vector<1x5x128xi32> to vector<5x128xi32>
    %516 = vector.extract_strided_slice %515 {offsets = [0, 0], sizes = [1, 128], strides = [1, 1]} : vector<5x128xi32> to vector<1x128xi32>
    %c1_i32_161 = arith.constant 1 : i32
    %517 = vector.broadcast %c1_i32_161 : i32 to vector<1x128xi32>
    %518 = arith.cmpi eq, %508, %517 : vector<1x128xi32>
    %519 = vector.extract_strided_slice %515 {offsets = [1, 0], sizes = [1, 128], strides = [1, 1]} : vector<5x128xi32> to vector<1x128xi32>
    %520 = arith.select %518, %519, %516 : vector<1x128xi1>, vector<1x128xi32>
    %c2_i32_162 = arith.constant 2 : i32
    %521 = vector.broadcast %c2_i32_162 : i32 to vector<1x128xi32>
    %522 = arith.cmpi eq, %508, %521 : vector<1x128xi32>
    %523 = vector.extract_strided_slice %515 {offsets = [2, 0], sizes = [1, 128], strides = [1, 1]} : vector<5x128xi32> to vector<1x128xi32>
    %524 = arith.select %522, %523, %520 : vector<1x128xi1>, vector<1x128xi32>
    %c3_i32_163 = arith.constant 3 : i32
    %525 = vector.broadcast %c3_i32_163 : i32 to vector<1x128xi32>
    %526 = arith.cmpi eq, %508, %525 : vector<1x128xi32>
    %527 = vector.extract_strided_slice %515 {offsets = [3, 0], sizes = [1, 128], strides = [1, 1]} : vector<5x128xi32> to vector<1x128xi32>
    %528 = arith.select %526, %527, %524 : vector<1x128xi1>, vector<1x128xi32>
    %c4_i32_164 = arith.constant 4 : i32
    %529 = vector.broadcast %c4_i32_164 : i32 to vector<1x128xi32>
    %530 = arith.cmpi eq, %508, %529 : vector<1x128xi32>
    %531 = vector.extract_strided_slice %515 {offsets = [4, 0], sizes = [1, 128], strides = [1, 1]} : vector<5x128xi32> to vector<1x128xi32>
    %532 = arith.select %530, %531, %528 : vector<1x128xi1>, vector<1x128xi32>
    %c3_i32_165 = arith.constant 3 : i32
    %533 = vector.broadcast %c3_i32_165 : i32 to vector<1x128xi32>
    %534 = arith.cmpi eq, %6, %533 : vector<1x128xi32>
    %535 = arith.select %534, %405, %532 : vector<1x128xi1>, vector<1x128xi32>
    %c3_i32_166 = arith.constant 3 : i32
    %536 = vector.broadcast %c3_i32_166 : i32 to vector<1x128xi32>
    %537 = arith.cmpi sge, %6, %536 : vector<1x128xi32>
    %c0_i32_167 = arith.constant 0 : i32
    %538 = vector.broadcast %c0_i32_167 : i32 to vector<1x128xi32>
    %539 = arith.select %537, %535, %538 : vector<1x128xi1>, vector<1x128xi32>
    %c3_168 = arith.constant 3 : index
    %c0_169 = arith.constant 0 : index
    %540 = vector.load %arg7[%c3_168, %c0_169] : memref<8x128xi32, #tpu.memory_space<vmem>>, vector<1x128xi32>
    tpu.vector_store %arg7[%c3_168, %c0_169], %539 {strides = array<i32>} : memref<8x128xi32, #tpu.memory_space<vmem>>, vector<1x128xi32>,
    %c3_170 = arith.constant 3 : index
    %c0_171 = arith.constant 0 : index
    %c0_172 = arith.constant 0 : index
    %541 = vector.load %arg8[%c3_170, %c0_171, %c0_172] : memref<8x5x128xi32, #tpu.memory_space<vmem>>, vector<1x5x128xi32>
    %542 = vector.shape_cast %541 : vector<1x5x128xi32> to vector<5x128xi32>
    %543 = vector.extract_strided_slice %542 {offsets = [0, 0], sizes = [1, 128], strides = [1, 1]} : vector<5x128xi32> to vector<1x128xi32>
    %c1_i32_173 = arith.constant 1 : i32
    %544 = vector.broadcast %c1_i32_173 : i32 to vector<1x128xi32>
    %545 = arith.cmpi eq, %535, %544 : vector<1x128xi32>
    %546 = vector.extract_strided_slice %542 {offsets = [1, 0], sizes = [1, 128], strides = [1, 1]} : vector<5x128xi32> to vector<1x128xi32>
    %547 = arith.select %545, %546, %543 : vector<1x128xi1>, vector<1x128xi32>
    %c2_i32_174 = arith.constant 2 : i32
    %548 = vector.broadcast %c2_i32_174 : i32 to vector<1x128xi32>
    %549 = arith.cmpi eq, %535, %548 : vector<1x128xi32>
    %550 = vector.extract_strided_slice %542 {offsets = [2, 0], sizes = [1, 128], strides = [1, 1]} : vector<5x128xi32> to vector<1x128xi32>
    %551 = arith.select %549, %550, %547 : vector<1x128xi1>, vector<1x128xi32>
    %c3_i32_175 = arith.constant 3 : i32
    %552 = vector.broadcast %c3_i32_175 : i32 to vector<1x128xi32>
    %553 = arith.cmpi eq, %535, %552 : vector<1x128xi32>
    %554 = vector.extract_strided_slice %542 {offsets = [3, 0], sizes = [1, 128], strides = [1, 1]} : vector<5x128xi32> to vector<1x128xi32>
    %555 = arith.select %553, %554, %551 : vector<1x128xi1>, vector<1x128xi32>
    %c4_i32_176 = arith.constant 4 : i32
    %556 = vector.broadcast %c4_i32_176 : i32 to vector<1x128xi32>
    %557 = arith.cmpi eq, %535, %556 : vector<1x128xi32>
    %558 = vector.extract_strided_slice %542 {offsets = [4, 0], sizes = [1, 128], strides = [1, 1]} : vector<5x128xi32> to vector<1x128xi32>
    %559 = arith.select %557, %558, %555 : vector<1x128xi1>, vector<1x128xi32>
    %c2_i32_177 = arith.constant 2 : i32
    %560 = vector.broadcast %c2_i32_177 : i32 to vector<1x128xi32>
    %561 = arith.cmpi eq, %6, %560 : vector<1x128xi32>
    %562 = arith.select %561, %405, %559 : vector<1x128xi1>, vector<1x128xi32>
    %c2_i32_178 = arith.constant 2 : i32
    %563 = vector.broadcast %c2_i32_178 : i32 to vector<1x128xi32>
    %564 = arith.cmpi sge, %6, %563 : vector<1x128xi32>
    %c0_i32_179 = arith.constant 0 : i32
    %565 = vector.broadcast %c0_i32_179 : i32 to vector<1x128xi32>
    %566 = arith.select %564, %562, %565 : vector<1x128xi1>, vector<1x128xi32>
    %c2_180 = arith.constant 2 : index
    %c0_181 = arith.constant 0 : index
    %567 = vector.load %arg7[%c2_180, %c0_181] : memref<8x128xi32, #tpu.memory_space<vmem>>, vector<1x128xi32>
    tpu.vector_store %arg7[%c2_180, %c0_181], %566 {strides = array<i32>} : memref<8x128xi32, #tpu.memory_space<vmem>>, vector<1x128xi32>,
    %c2_182 = arith.constant 2 : index
    %c0_183 = arith.constant 0 : index
    %c0_184 = arith.constant 0 : index
    %568 = vector.load %arg8[%c2_182, %c0_183, %c0_184] : memref<8x5x128xi32, #tpu.memory_space<vmem>>, vector<1x5x128xi32>
    %569 = vector.shape_cast %568 : vector<1x5x128xi32> to vector<5x128xi32>
    %570 = vector.extract_strided_slice %569 {offsets = [0, 0], sizes = [1, 128], strides = [1, 1]} : vector<5x128xi32> to vector<1x128xi32>
    %c1_i32_185 = arith.constant 1 : i32
    %571 = vector.broadcast %c1_i32_185 : i32 to vector<1x128xi32>
    %572 = arith.cmpi eq, %562, %571 : vector<1x128xi32>
    %573 = vector.extract_strided_slice %569 {offsets = [1, 0], sizes = [1, 128], strides = [1, 1]} : vector<5x128xi32> to vector<1x128xi32>
    %574 = arith.select %572, %573, %570 : vector<1x128xi1>, vector<1x128xi32>
    %c2_i32_186 = arith.constant 2 : i32
    %575 = vector.broadcast %c2_i32_186 : i32 to vector<1x128xi32>
    %576 = arith.cmpi eq, %562, %575 : vector<1x128xi32>
    %577 = vector.extract_strided_slice %569 {offsets = [2, 0], sizes = [1, 128], strides = [1, 1]} : vector<5x128xi32> to vector<1x128xi32>
    %578 = arith.select %576, %577, %574 : vector<1x128xi1>, vector<1x128xi32>
    %c3_i32_187 = arith.constant 3 : i32
    %579 = vector.broadcast %c3_i32_187 : i32 to vector<1x128xi32>
    %580 = arith.cmpi eq, %562, %579 : vector<1x128xi32>
    %581 = vector.extract_strided_slice %569 {offsets = [3, 0], sizes = [1, 128], strides = [1, 1]} : vector<5x128xi32> to vector<1x128xi32>
    %582 = arith.select %580, %581, %578 : vector<1x128xi1>, vector<1x128xi32>
    %c4_i32_188 = arith.constant 4 : i32
    %583 = vector.broadcast %c4_i32_188 : i32 to vector<1x128xi32>
    %584 = arith.cmpi eq, %562, %583 : vector<1x128xi32>
    %585 = vector.extract_strided_slice %569 {offsets = [4, 0], sizes = [1, 128], strides = [1, 1]} : vector<5x128xi32> to vector<1x128xi32>
    %586 = arith.select %584, %585, %582 : vector<1x128xi1>, vector<1x128xi32>
    %c1_i32_189 = arith.constant 1 : i32
    %587 = vector.broadcast %c1_i32_189 : i32 to vector<1x128xi32>
    %588 = arith.cmpi eq, %6, %587 : vector<1x128xi32>
    %589 = arith.select %588, %405, %586 : vector<1x128xi1>, vector<1x128xi32>
    %c1_i32_190 = arith.constant 1 : i32
    %590 = vector.broadcast %c1_i32_190 : i32 to vector<1x128xi32>
    %591 = arith.cmpi sge, %6, %590 : vector<1x128xi32>
    %c0_i32_191 = arith.constant 0 : i32
    %592 = vector.broadcast %c0_i32_191 : i32 to vector<1x128xi32>
    %593 = arith.select %591, %589, %592 : vector<1x128xi1>, vector<1x128xi32>
    %c1_192 = arith.constant 1 : index
    %c0_193 = arith.constant 0 : index
    %594 = vector.load %arg7[%c1_192, %c0_193] : memref<8x128xi32, #tpu.memory_space<vmem>>, vector<1x128xi32>
    tpu.vector_store %arg7[%c1_192, %c0_193], %593 {strides = array<i32>} : memref<8x128xi32, #tpu.memory_space<vmem>>, vector<1x128xi32>,
    %c1_194 = arith.constant 1 : index
    %c0_195 = arith.constant 0 : index
    %c0_196 = arith.constant 0 : index
    %595 = vector.load %arg8[%c1_194, %c0_195, %c0_196] : memref<8x5x128xi32, #tpu.memory_space<vmem>>, vector<1x5x128xi32>
    %596 = vector.shape_cast %595 : vector<1x5x128xi32> to vector<5x128xi32>
    %597 = vector.extract_strided_slice %596 {offsets = [0, 0], sizes = [1, 128], strides = [1, 1]} : vector<5x128xi32> to vector<1x128xi32>
    %c1_i32_197 = arith.constant 1 : i32
    %598 = vector.broadcast %c1_i32_197 : i32 to vector<1x128xi32>
    %599 = arith.cmpi eq, %589, %598 : vector<1x128xi32>
    %600 = vector.extract_strided_slice %596 {offsets = [1, 0], sizes = [1, 128], strides = [1, 1]} : vector<5x128xi32> to vector<1x128xi32>
    %601 = arith.select %599, %600, %597 : vector<1x128xi1>, vector<1x128xi32>
    %c2_i32_198 = arith.constant 2 : i32
    %602 = vector.broadcast %c2_i32_198 : i32 to vector<1x128xi32>
    %603 = arith.cmpi eq, %589, %602 : vector<1x128xi32>
    %604 = vector.extract_strided_slice %596 {offsets = [2, 0], sizes = [1, 128], strides = [1, 1]} : vector<5x128xi32> to vector<1x128xi32>
    %605 = arith.select %603, %604, %601 : vector<1x128xi1>, vector<1x128xi32>
    %c3_i32_199 = arith.constant 3 : i32
    %606 = vector.broadcast %c3_i32_199 : i32 to vector<1x128xi32>
    %607 = arith.cmpi eq, %589, %606 : vector<1x128xi32>
    %608 = vector.extract_strided_slice %596 {offsets = [3, 0], sizes = [1, 128], strides = [1, 1]} : vector<5x128xi32> to vector<1x128xi32>
    %609 = arith.select %607, %608, %605 : vector<1x128xi1>, vector<1x128xi32>
    %c4_i32_200 = arith.constant 4 : i32
    %610 = vector.broadcast %c4_i32_200 : i32 to vector<1x128xi32>
    %611 = arith.cmpi eq, %589, %610 : vector<1x128xi32>
    %612 = vector.extract_strided_slice %596 {offsets = [4, 0], sizes = [1, 128], strides = [1, 1]} : vector<5x128xi32> to vector<1x128xi32>
    %613 = arith.select %611, %612, %609 : vector<1x128xi1>, vector<1x128xi32>
    %c0_i32_201 = arith.constant 0 : i32
    %614 = vector.broadcast %c0_i32_201 : i32 to vector<1x128xi32>
    %615 = arith.cmpi eq, %6, %614 : vector<1x128xi32>
    %616 = arith.select %615, %405, %613 : vector<1x128xi1>, vector<1x128xi32>
    %c0_i32_202 = arith.constant 0 : i32
    %617 = vector.broadcast %c0_i32_202 : i32 to vector<1x128xi32>
    %618 = arith.cmpi sge, %6, %617 : vector<1x128xi32>
    %c0_i32_203 = arith.constant 0 : i32
    %619 = vector.broadcast %c0_i32_203 : i32 to vector<1x128xi32>
    %620 = arith.select %618, %616, %619 : vector<1x128xi1>, vector<1x128xi32>
    %c0_204 = arith.constant 0 : index
    %c0_205 = arith.constant 0 : index
    %621 = vector.load %arg7[%c0_204, %c0_205] : memref<8x128xi32, #tpu.memory_space<vmem>>, vector<1x128xi32>
    tpu.vector_store %arg7[%c0_204, %c0_205], %620 {strides = array<i32>} : memref<8x128xi32, #tpu.memory_space<vmem>>, vector<1x128xi32>,
    return
  }
  func.func @transform_0(%arg0: i32) -> (i32, i32) {
    %c0_i32 = arith.constant 0 : i32
    %c0_i32_0 = arith.constant 0 : i32
    return %c0_i32, %arg0 : i32, i32
  }
  func.func @transform_1(%arg0: i32) -> (i32, i32, i32) {
    %c0_i32 = arith.constant 0 : i32
    %c0_i32_0 = arith.constant 0 : i32
    %c0_i32_1 = arith.constant 0 : i32
    return %c0_i32, %c0_i32_0, %arg0 : i32, i32, i32
  }
  func.func @transform_2(%arg0: i32) -> (i32, i32) {
    %c0_i32 = arith.constant 0 : i32
    %c0_i32_0 = arith.constant 0 : i32
    %c0_i32_1 = arith.constant 0 : i32
    return %c0_i32, %c0_i32_0 : i32, i32
  }
  func.func @transform_3(%arg0: i32) -> (i32, i32) {
    %c0_i32 = arith.constant 0 : i32
    %c0_i32_0 = arith.constant 0 : i32
    %c0_i32_1 = arith.constant 0 : i32
    return %c0_i32, %c0_i32_0 : i32, i32
  }
  func.func @transform_4(%arg0: i32) -> (i32, i32) {
    %c0_i32 = arith.constant 0 : i32
    %c0_i32_0 = arith.constant 0 : i32
    %c0_i32_1 = arith.constant 0 : i32
    return %c0_i32, %c0_i32_0 : i32, i32
  }
  func.func @transform_5(%arg0: i32) -> (i32, i32, i32) {
    %c0_i32 = arith.constant 0 : i32
    %c0_i32_0 = arith.constant 0 : i32
    %c0_i32_1 = arith.constant 0 : i32
    return %c0_i32, %c0_i32_0, %arg0 : i32, i32, i32
  }
  func.func @transform_6(%arg0: i32) -> (i32, i32) {
    %c0_i32 = arith.constant 0 : i32
    %c0_i32_0 = arith.constant 0 : i32
    return %c0_i32, %arg0 : i32, i32
  }
}

</mosaic_0001>

<bundles_post_ra>
// kernel: crf_forward.1
= control target key start
LH: loop header
LB: loop body
LE: loop exit
PB: predicated region body
PF: predicated region fallthrough
CT: control target
= control target key end

     0   :  { %v1502_v0 = vmov 0.0   ;;  %vm1503_vm0 = vmmov 0   ;;  %v1504_v4 = vmov 1   ;;  %v1505_v6 = vmov 0   ;;  %s1937_s1 = inlined_call_operand.vmem [shape: bf16[8,32,128], index: 1, kind: input, shape index: {}]   ;;  %s1938_s2 = inlined_call_operand.vmem [shape: bf16[5,32], index: 2, kind: input, shape index: {}]   ;;  %s1939_s4 = inlined_call_operand.vmem [shape: f32[5,5], index: 4, kind: input, shape index: {}]   ;;  %s1940_s3 = inlined_call_operand.vmem [shape: f32[5,1], index: 3, kind: input, shape index: {}]   ;;  %s1941_s0 = inlined_call_operand.vmem [shape: s32[1,128], index: 0, kind: input, shape index: {}]   ;;  %s1942_s5 = inlined_call_operand.vmem [shape: f32[8,5,128], index: 5, kind: output, shape index: {0}]   ;;  %s1943_s6 = inlined_call_operand.vmem [shape: s32[8,128], index: 6, kind: output, shape index: {1}]  }
   0x1   :  { %1401 = vmatprep.subr.bf16.mxu0 %v1502_v0  ;;  %1409 = vmatprep.subr.bf16.mxu1 %v1502_v0  ;;  %v1479_v1 = vld [vmem:[%s1937_s1] sm:$0xff]   ;;  %v1480_v2 = vld [vmem:[%s1937_s1 + $0x10] sm:$0xff]   ;;  %v1481_v3 = vld [vmem:[%s1937_s1 + $0x8] sm:$0xff]   ;;  %vm49_vm1 = vcmask 261120   ;;  %v1506_v19 = vmov 2   ;;  %v1507_v23 = vmov 4   ;;  %v153_v25 = vlaneseq }
   0x2   :  { %1405 = vmatprep.mubr.msk.bf16.mxu0 %vm1503_vm0, %v1502_v0  ;;  %1413 = vmatprep.mubr.msk.bf16.mxu1 %vm1503_vm0, %v1502_v0  ;;  %v1482_v5 = vld [vmem:[%s1937_s1 + $0x18] sm:$0xff]   ;;  %v1569_v7 = vld [vmem:[%s1938_s2] sm:$0x7]  ;;  %v1484_v9 = vld [vmem:[%s1937_s1 + $0x30] sm:$0xff]   ;;  %v1508_v24 = vmov 3  }
   0x3   :  { %1402 = vmatpush3.bf16.msra.mxu0 %v1479_v1  ;;  %1474 = vset.pattern.permute.xlu1 %v1504_v4  ;;  %v1483_v8 = vld [vmem:[%s1937_s1 + $0x20] sm:$0xff]   ;;  %v1485_v10 = vld [vmem:[%s1937_s1 + $0x28] sm:$0xff]   ;;  %v1486_v11 = vld [vmem:[%s1937_s1 + $0x38] sm:$0xff]   ;;  %v1657_v28 = vshrl.u32 %v153_v25, 7 }
   0x4   :  { %1410 = vmatpush3.bf16.msra.mxu1 %v1480_v2  ;;  %1403 = vmatprep.subr.bf16.mxu0 %v1502_v0  ;;  %v1487_v12 = vld [vmem:[%s1937_s1 + $0x40] sm:$0xff]   ;;  %v1488_v13 = vld [vmem:[%s1937_s1 + $0x50] sm:$0xff]   ;;  %v1489_v15 = vld [vmem:[%s1937_s1 + $0x48] sm:$0xff]  }
   0x5   :  { %1411 = vmatprep.subr.bf16.mxu1 %v1502_v0  ;;  %1473 = vset.pattern.permute.xlu0 %v1505_v6  ;;  %v32_v14 = vld [vmem:[%s1939_s4] sm:$0x1f]  ;;  %v1490_v17 = vld [vmem:[%s1937_s1 + $0x58] sm:$0xff]   ;;  %v1492_v20 = vld [vmem:[%s1937_s1 + $0x70] sm:$0xff]   ;;  %v1662_v30 = vsub.s32 0, %v1657_v28  ;;  %v1665_v31 = vsub.s32 1, %v1657_v28 }
   0x6   :  { %168 = vperm.xlu1 %1474, %v32_v14   ;;  %v24_v16 = vld [vmem:[%s1940_s3] sm:$0x1f]  ;;  %v1493_v21 = vld [vmem:[%s1937_s1 + $0x68] sm:$0xff]   ;;  %v1494_v22 = vld [vmem:[%s1937_s1 + $0x78] sm:$0xff]   ;;  %v1668_v32 = vsub.s32 2, %v1657_v28  ;;  %v1674_v38 = vsub.s32 3, %v1657_v28 }
   0x7   :  { %1404 = vmatpush3.bf16.msra.mxu0 %v1481_v3  ;;  %27 = vperm.xlu0 %1473, %v24_v16   ;;  %v1491_v18 = vld [vmem:[%s1937_s1 + $0x60] sm:$0xff]   ;;  %v1686_v44 = vsub.s32 4, %v1657_v28 }
   0x8   :  { %1412 = vmatpush3.bf16.msra.mxu1 %v1482_v5  ;;  %1417 = vmatprep.subr.bf16.mxu0 %v1502_v0  ;;  %v1679_v39 = vld [vmem:[%s1941_s0] sm:$0x1] }
   0x9   :  { %1425 = vmatprep.subr.bf16.mxu1 %v1502_v0  ;;  %vm213_vm2 = vcmp.gt.s32.totalorder %v1679_v39, 1  ;;  %vm320_vm8 = vcmp.gt.s32.totalorder %v1679_v39, 2  ;;  %vm427_vm14 = vcmp.gt.s32.totalorder %v1679_v39, 3 }
   0xa   :  { %1406 = vmatmul.mubr.msk.bf16.vlgmr.msra.gmra.mrb[0].mxu0 %vm49_vm1, %v1569_v7  ;;  %1475 = vset.pattern.permute.xlu1 %v1506_v19  ;;  %v215_v56 = vsel %vm213_vm2, 1, %v1505_v6 }
   0xb   :  { %1414 = vmatmul.mubr.msk.bf16.vlgmr.msra.gmra.mrb[0].mxu1 %vm49_vm1, %v1569_v7  ;;  %1418 = vmatpush3.bf16.msra.mxu0 %v1483_v8  ;;  %v219_v3 = vrot.slane %v215_v56, %v1662_v30 }
   0xc   :  { %1426 = vmatpush3.bf16.msra.mxu1 %v1484_v9  ;;  %1419 = vmatprep.subr.bf16.mxu0 %v1502_v0 }
   0xd   :  { %1427 = vmatprep.subr.bf16.mxu1 %v1502_v0  ;;  %1421 = vmatprep.mubr.msk.bf16.mxu0 %vm1503_vm0, %v1502_v0  ;;  %vm220_vm7 = vcmp.eq.s32.totalorder %v219_v3, 1 }
   0xe   :  { %1429 = vmatprep.mubr.msk.bf16.mxu1 %vm1503_vm0, %v1502_v0  ;;  %180 = vperm.xlu1 %1475, %v32_v14  }
   0xf   :  { %1420 = vmatpush3.bf16.msra.mxu0 %v1485_v10  ;;  %159 = vperm.xlu0 %1473, %v32_v14  }
  0x10   :  { %1428 = vmatpush3.bf16.msra.mxu1 %v1486_v11  ;;  %1433 = vmatprep.subr.bf16.mxu0 %v1502_v0 }
  0x11   :  { %1441 = vmatprep.subr.bf16.mxu1 %v1502_v0 }
  0x12   :  { %1422 = vmatmul.mubr.msk.bf16.vlgmr.msra.gmra.mrb[4].mxu0 %vm49_vm1, %v1569_v7  ;;  %1477 = vset.pattern.permute.xlu1 %v1507_v23 }
  0x13   :  { %1430 = vmatmul.mubr.msk.bf16.vlgmr.msra.gmra.mrb[4].mxu1 %vm49_vm1, %v1569_v7  ;;  %1434 = vmatpush3.bf16.msra.mxu0 %v1487_v12 }
  0x14   :  { %1442 = vmatpush3.bf16.msra.mxu1 %v1488_v13  ;;  %1435 = vmatprep.subr.bf16.mxu0 %v1502_v0 }
  0x15   :  { %1443 = vmatprep.subr.bf16.mxu1 %v1502_v0  ;;  %1437 = vmatprep.mubr.msk.bf16.mxu0 %vm1503_vm0, %v1502_v0 }
  0x16   :  { %1445 = vmatprep.mubr.msk.bf16.mxu1 %vm1503_vm0, %v1502_v0  ;;  %1476 = vset.pattern.permute.xlu0 %v1508_v24 }
  0x17   :  { %1436 = vmatpush3.bf16.msra.mxu0 %v1489_v15  ;;  %204 = vperm.xlu1 %1477, %v32_v14  }
  0x18   :  { %1444 = vmatpush3.bf16.msra.mxu1 %v1490_v17  ;;  %1449 = vmatprep.subr.bf16.mxu0 %v1502_v0 }
  0x19   :  { %1457 = vmatprep.subr.bf16.mxu1 %v1502_v0  ;;  %192 = vperm.xlu0 %1476, %v32_v14  }
  0x1a   :  { %1438 = vmatmul.mubr.msk.bf16.vlgmr.msra.gmra.mrb[8].mxu0 %vm49_vm1, %v1569_v7 }
  0x1b   :  { %1446 = vmatmul.mubr.msk.bf16.vlgmr.msra.gmra.mrb[8].mxu1 %vm49_vm1, %v1569_v7  ;;  %1450 = vmatpush3.bf16.msra.mxu0 %v1491_v18 }
  0x1c   :  { %1458 = vmatpush3.bf16.msra.mxu1 %v1492_v20  ;;  %1451 = vmatprep.subr.bf16.mxu0 %v1502_v0 }
  0x1d   :  { %1459 = vmatprep.subr.bf16.mxu1 %v1502_v0  ;;  %1453 = vmatprep.mubr.msk.bf16.mxu0 %vm1503_vm0, %v1502_v0 }
  0x1e   :  { %1461 = vmatprep.mubr.msk.bf16.mxu1 %vm1503_vm0, %v1502_v0  ;;  %1478 = vset.pattern.permute.xlu0 %v1507_v23 }
  0x1f   :  { %1452 = vmatpush3.bf16.msra.mxu0 %v1493_v21 }
  0x20   :  { %1460 = vmatpush3.bf16.msra.mxu1 %v1494_v22 }
  0x22   :  { %1454 = vmatmul.mubr.msk.bf16.vlgmr.msra.gmra.mrb[12].mxu0 %vm49_vm1, %v1569_v7 }
  0x23   :  { %1462 = vmatmul.mubr.msk.bf16.vlgmr.msra.gmra.mrb[12].mxu1 %vm49_vm1, %v1569_v7 }
  0x85   :  { %v1653_v26 = vpop.permute.xlu1 %168 }
  0x86   :  { %v1655_v27 = vpop.permute.xlu0 %27 }
  0x8d   :  { %v1659_v29 = vpop.permute.xlu1 %180 }
  0x8e   :  { %v1670_v33 = vpop.permute.xlu0 %159 }
  0x96   :  { %v1703_v57 = vpop.permute.xlu1 %204 }
  0x98   :  { %v1698_v53 = vpop.permute.xlu0 %192 }
  0xdd   :  { %v87_v34 = vpop.f32.mrb[0].mxu0 }
  0xde   :  { %v88_v35 = vadd.f32 %v87_v34, %v1655_v27  ;;  %v145_v36 = vpop.f32.mrb[0].mxu1  ;;  %v1407_v37 = vpop.f32.mrb[1].mxu0 }
  0xdf   :  { %v146_v40 = vadd.f32 %v145_v36, %v1655_v27  ;;  %v90_v41 = vpop.f32.mrb[2].mxu0  ;;  %v1415_v42 = vpop.f32.mrb[1].mxu1 }
  0xe0   :  { %93 = vst [vmem:[%s1942_s5] sm:$0x1f] %v88_v35  ;;  %v1408_v43 = vpop.f32.mrb[3].mxu0  ;;  %v156_v45 = vrot.slane %v88_v35, %v1662_v30  ;;  %v166_v46 = vrot.slane %v88_v35, %v1665_v31  ;;  %v178_v47 = vrot.slane %v88_v35, %v1668_v32  ;;  %v148_v48 = vpop.f32.mrb[2].mxu1  ;;  %v190_v52 = vrot.slane %v88_v35, %v1674_v38 }
  0xe1   :  { %1328 = vst [vmem:[%s1942_s5 + $0x8] sm:$0x1f] %v146_v40  ;;  %v1416_v49 = vpop.f32.mrb[3].mxu1  ;;  %v202_v54 = vrot.slane %v88_v35, %v1686_v44 }
  0xe2   :  { %v162_v50 = vadd.f32 %v1670_v33, %v156_v45  ;;  %v171_v51 = vadd.f32 %v1653_v26, %v166_v46  ;;  %v183_v55 = vadd.f32 %v1659_v29, %v178_v47  ;;  %v195_v61 = vadd.f32 %v1698_v53, %v190_v52 }
  0xe3   :  { %v207_v8 = vadd.f32 %v1703_v57, %v202_v54  ;;  %v322_v47 = vsel %vm320_vm8, 1, %v1505_v6 }
  0xe4   :  { %vm172_vm3 = vcmp.gt.f32.partialorder %v171_v51, %v162_v50 }
  0xe5   :  { %v173_v58 = vsel %vm172_vm3, %v171_v51, %v162_v50  ;;  %v174_v59 = vsel %vm172_vm3, 1, %v1505_v6  ;;  %v273_v60 = vpop.f32.mrb[4].mxu0 }
  0xe6   :  { %vm184_vm4 = vcmp.gt.f32.partialorder %v183_v55, %v173_v58  ;;  %v1708_v62 = vadd.f32 %v273_v60, %v1655_v27  ;;  %v380_v63 = vpop.f32.mrb[4].mxu1  ;;  %v1423_v0 = vpop.f32.mrb[5].mxu0 }
  0xe7   :  { %v185_v1 = vsel %vm184_vm4, %v183_v55, %v173_v58  ;;  %v186_v2 = vsel %vm184_vm4, 2, %v174_v59  ;;  %v1712_v4 = vadd.f32 %v380_v63, %v1655_v27  ;;  %v1431_v5 = vpop.f32.mrb[5].mxu1  ;;  %v276_v7 = vpop.f32.mrb[6].mxu0  ;;  %v326_v55 = vrot.slane %v322_v47, %v1662_v30 }
  0xe8   :  { %vm196_vm5 = vcmp.gt.f32.partialorder %v195_v61, %v185_v1  ;;  %1336 = vst [vmem:[%s1942_s5 + $0x10] sm:$0x1f] %v1708_v62  ;;  %v383_v9 = vpop.f32.mrb[6].mxu1  ;;  %v1424_v10 = vpop.f32.mrb[7].mxu0  ;;  %vm534_vm4 = vcmp.gt.s32.totalorder %v1679_v39, 4 }
  0xe9   :  { %v197_v11 = vsel %vm196_vm5, %v195_v61, %v185_v1  ;;  %v198_v12 = vsel %vm196_vm5, 3, %v186_v2  ;;  %1344 = vst [vmem:[%s1942_s5 + $0x18] sm:$0x1f] %v1712_v4  ;;  %v1432_v13 = vpop.f32.mrb[7].mxu1  ;;  %vm327_vm13 = vcmp.eq.s32.totalorder %v326_v55, 1 }
  0xea   :  { %vm208_vm6 = vcmp.gt.f32.partialorder %v207_v8, %v197_v11 }
  0xeb   :  { %v209_v14 = vsel %vm208_vm6, %v207_v8, %v197_v11  ;;  %v210_v15 = vsel %vm208_vm6, 4, %v198_v12 }
  0xec   :  { %212 = vst [vmem:[#allocation2 + $0x8] sm:$0x1f] %v210_v15  ;;  %v214_v16 = vadd.f32 %v209_v14, %v146_v40 }
  0xed   :  { %v487_v17 = vpop.f32.mrb[8].mxu0 }
  0xee   :  { %v221_v18 = vsel %vm220_vm7, %v214_v16, %v88_v35  ;;  %v1724_v19 = vadd.f32 %v487_v17, %v1655_v27  ;;  %v594_v20 = vpop.f32.mrb[8].mxu1  ;;  %v1439_v21 = vpop.f32.mrb[9].mxu0 }
  0xef   :  { %v284_v22 = vrot.slane %v221_v18, %v1662_v30  ;;  %v289_v23 = vrot.slane %v221_v18, %v1665_v31  ;;  %v297_v24 = vrot.slane %v221_v18, %v1668_v32  ;;  %v1447_v25 = vpop.f32.mrb[9].mxu1  ;;  %v490_v34 = vpop.f32.mrb[10].mxu0  ;;  %v1735_v35 = vadd.f32 %v594_v20, %v1655_v27 }
  0xf0   :  { %1352 = vst [vmem:[%s1942_s5 + $0x20] sm:$0x1f] %v1724_v19  ;;  %v597_v36 = vpop.f32.mrb[10].mxu1  ;;  %v1440_v37 = vpop.f32.mrb[11].mxu0  ;;  %v305_v42 = vrot.slane %v221_v18, %v1674_v38  ;;  %v313_v45 = vrot.slane %v221_v18, %v1686_v44 }
  0xf1   :  { %v285_v40 = vadd.f32 %v284_v22, %v1670_v33  ;;  %v290_v41 = vadd.f32 %v289_v23, %v1653_v26  ;;  %v1448_v43 = vpop.f32.mrb[11].mxu1  ;;  %1360 = vst [vmem:[%s1942_s5 + $0x28] sm:$0x1f] %v1735_v35  ;;  %v298_v46 = vadd.f32 %v297_v24, %v1659_v29 }
  0xf2   :  { %v306_v50 = vadd.f32 %v305_v42, %v1698_v53  ;;  %v314_v54 = vadd.f32 %v313_v45, %v1703_v57 }
  0xf3   :  { %vm291_vm9 = vcmp.gt.f32.partialorder %v290_v41, %v285_v40 }
  0xf4   :  { %v292_v48 = vsel %vm291_vm9, %v290_v41, %v285_v40  ;;  %v293_v49 = vsel %vm291_vm9, 1, %v1505_v6 }
  0xf5   :  { %vm299_vm10 = vcmp.gt.f32.partialorder %v298_v46, %v292_v48  ;;  %v701_v51 = vpop.f32.mrb[12].mxu0 }
  0xf6   :  { %v300_v52 = vsel %vm299_vm10, %v298_v46, %v292_v48  ;;  %v808_v56 = vpop.f32.mrb[12].mxu1  ;;  %v1455_v58 = vpop.f32.mrb[13].mxu0  ;;  %v301_v59 = vsel %vm299_vm10, 2, %v293_v49  ;;  %v1752_v60 = vadd.f32 %v701_v51, %v1655_v27  ;;  %vm641_vm10 = vcmp.gt.s32.totalorder %v1679_v39, 5 }
  0xf7   :  { %vm307_vm11 = vcmp.gt.f32.partialorder %v306_v50, %v300_v52  ;;  %v1755_v61 = vadd.f32 %v808_v56, %v1655_v27  ;;  %v704_v63 = vpop.f32.mrb[14].mxu0  ;;  %v1463_v0 = vpop.f32.mrb[13].mxu1 }
  0xf8   :  { %v308_v1 = vsel %vm307_vm11, %v306_v50, %v300_v52  ;;  %v1456_v2 = vpop.f32.mrb[15].mxu0  ;;  %v811_v3 = vpop.f32.mrb[14].mxu1  ;;  %v309_v5 = vsel %vm307_vm11, 3, %v301_v59  ;;  %1368 = vst [vmem:[%s1942_s5 + $0x30] sm:$0x1f] %v1752_v60  ;;  %v536_v52 = vsel %vm534_vm4, 1, %v1505_v6 }
  0xf9   :  { %vm315_vm12 = vcmp.gt.f32.partialorder %v314_v54, %v308_v1  ;;  %1376 = vst [vmem:[%s1942_s5 + $0x38] sm:$0x1f] %v1755_v61  ;;  %v1464_v7 = vpop.f32.mrb[15].mxu1  ;;  %v540_v59 = vrot.slane %v536_v52, %v1662_v30 }
  0xfa   :  { %v316_v27 = vsel %vm315_vm12, %v314_v54, %v308_v1  ;;  %v317_v8 = vsel %vm315_vm12, 4, %v309_v5 }
  0xfb   :  { %319 = vst [vmem:[#allocation2 + $0x10] sm:$0x1f] %v317_v8  ;;  %v321_v9 = vadd.f32 %v316_v27, %v1708_v62  ;;  %vm541_vm9 = vcmp.eq.s32.totalorder %v540_v59, 1 }
  0xfd   :  { %v328_v10 = vsel %vm327_vm13, %v321_v9, %v221_v18  ;;  %v429_v18 = vsel %vm427_vm14, 1, %v1505_v6 }
  0xfe   :  { %v391_v11 = vrot.slane %v328_v10, %v1662_v30  ;;  %v396_v12 = vrot.slane %v328_v10, %v1665_v31  ;;  %v404_v13 = vrot.slane %v328_v10, %v1668_v32  ;;  %v412_v16 = vrot.slane %v328_v10, %v1674_v38 }
  0xff   :  { %v420_v62 = vrot.slane %v328_v10, %v1686_v44  ;;  %v433_v24 = vrot.slane %v429_v18, %v1662_v30 }
 0x100   :  { %v392_v14 = vadd.f32 %v391_v11, %v1670_v33  ;;  %v397_v15 = vadd.f32 %v396_v12, %v1653_v26  ;;  %v405_v17 = vadd.f32 %v404_v13, %v1659_v29  ;;  %v413_v22 = vadd.f32 %v412_v16, %v1698_v53 }
 0x101   :  { %v421_v34 = vadd.f32 %v420_v62, %v1703_v57  ;;  %vm434_vm3 = vcmp.eq.s32.totalorder %v433_v24, 1 }
 0x102   :  { %vm398_vm15 = vcmp.gt.f32.partialorder %v397_v15, %v392_v14 }
 0x103   :  { %v399_v20 = vsel %vm398_vm15, %v397_v15, %v392_v14  ;;  %v400_v21 = vsel %vm398_vm15, 1, %v1505_v6  ;;  %v643_v15 = vsel %vm641_vm10, 1, %v1505_v6 }
 0x104   :  { %vm406_vm0 = vcmp.gt.f32.partialorder %v405_v17, %v399_v20 }
 0x105   :  { %v407_v23 = vsel %vm406_vm0, %v405_v17, %v399_v20  ;;  %v408_v25 = vsel %vm406_vm0, 2, %v400_v21  ;;  %v647_v20 = vrot.slane %v643_v15, %v1662_v30  ;;  %vm748_vm0 = vcmp.gt.s32.totalorder %v1679_v39, 6 }
 0x106   :  { %vm414_vm1 = vcmp.gt.f32.partialorder %v413_v22, %v407_v23 }
 0x107   :  { %v415_v36 = vsel %vm414_vm1, %v413_v22, %v407_v23  ;;  %v416_v37 = vsel %vm414_vm1, 3, %v408_v25  ;;  %vm648_vm15 = vcmp.eq.s32.totalorder %v647_v20, 1 }
 0x108   :  { %vm422_vm2 = vcmp.gt.f32.partialorder %v421_v34, %v415_v36 }
 0x109   :  { %v423_v40 = vsel %vm422_vm2, %v421_v34, %v415_v36  ;;  %v424_v41 = vsel %vm422_vm2, 4, %v416_v37 }
 0x10a   :  { %426 = vst [vmem:[#allocation2 + $0x18] sm:$0x1f] %v424_v41  ;;  %v428_v42 = vadd.f32 %v423_v40, %v1712_v4 }
 0x10c   :  { %v435_v43 = vsel %vm434_vm3, %v428_v42, %v328_v10 }
 0x10d   :  { %v498_v45 = vrot.slane %v435_v43, %v1662_v30  ;;  %v503_v46 = vrot.slane %v435_v43, %v1665_v31  ;;  %v511_v47 = vrot.slane %v435_v43, %v1668_v32  ;;  %v519_v50 = vrot.slane %v435_v43, %v1674_v38 }
 0x10e   :  { %v527_v4 = vrot.slane %v435_v43, %v1686_v44 }
 0x10f   :  { %v499_v48 = vadd.f32 %v498_v45, %v1670_v33  ;;  %v504_v49 = vadd.f32 %v503_v46, %v1653_v26  ;;  %v512_v51 = vadd.f32 %v511_v47, %v1659_v29  ;;  %v520_v56 = vadd.f32 %v519_v50, %v1698_v53 }
 0x110   :  { %v528_v0 = vadd.f32 %v527_v4, %v1703_v57 }
 0x111   :  { %vm505_vm5 = vcmp.gt.f32.partialorder %v504_v49, %v499_v48 }
 0x112   :  { %v506_v54 = vsel %vm505_vm5, %v504_v49, %v499_v48  ;;  %v507_v55 = vsel %vm505_vm5, 1, %v1505_v6  ;;  %v750_v48 = vsel %vm748_vm0, 1, %v1505_v6 }
 0x113   :  { %vm513_vm6 = vcmp.gt.f32.partialorder %v512_v51, %v506_v54  ;;  %v754_v52 = vrot.slane %v750_v48, %v1662_v30 }
 0x114   :  { %v514_v58 = vsel %vm513_vm6, %v512_v51, %v506_v54  ;;  %v515_v63 = vsel %vm513_vm6, 2, %v507_v55  ;;  %vm855_vm6 = vcmp.gt.s32.totalorder %v1679_v39, 7 }
 0x115   :  { %vm521_vm7 = vcmp.gt.f32.partialorder %v520_v56, %v514_v58  ;;  %vm755_vm5 = vcmp.eq.s32.totalorder %v754_v52, 1 }
 0x116   :  { %v522_v1 = vsel %vm521_vm7, %v520_v56, %v514_v58  ;;  %v523_v2 = vsel %vm521_vm7, 3, %v515_v63 }
 0x117   :  { %vm529_vm8 = vcmp.gt.f32.partialorder %v528_v0, %v522_v1 }
 0x118   :  { %v530_v3 = vsel %vm529_vm8, %v528_v0, %v522_v1  ;;  %v531_v5 = vsel %vm529_vm8, 4, %v523_v2 }
 0x119   :  { %533 = vst [vmem:[#allocation2 + $0x20] sm:$0x1f] %v531_v5  ;;  %v535_v7 = vadd.f32 %v530_v3, %v1724_v19 }
 0x11b   :  { %v542_v27 = vsel %vm541_vm9, %v535_v7, %v435_v43 }
 0x11c   :  { %v605_v8 = vrot.slane %v542_v27, %v1662_v30  ;;  %v610_v9 = vrot.slane %v542_v27, %v1665_v31  ;;  %v618_v10 = vrot.slane %v542_v27, %v1668_v32  ;;  %v626_v13 = vrot.slane %v542_v27, %v1674_v38 }
 0x11d   :  { %v634_v19 = vrot.slane %v542_v27, %v1686_v44 }
 0x11e   :  { %v606_v11 = vadd.f32 %v605_v8, %v1670_v33  ;;  %v611_v12 = vadd.f32 %v610_v9, %v1653_v26  ;;  %v619_v14 = vadd.f32 %v618_v10, %v1659_v29  ;;  %v627_v62 = vadd.f32 %v626_v13, %v1698_v53 }
 0x11f   :  { %v635_v22 = vadd.f32 %v634_v19, %v1703_v57  ;;  %v857_v10 = vsel %vm855_vm6, 1, %v1505_v6 }
 0x120   :  { %vm612_vm11 = vcmp.gt.f32.partialorder %v611_v12, %v606_v11 }
 0x121   :  { %v613_v16 = vsel %vm612_vm11, %v611_v12, %v606_v11  ;;  %v614_v17 = vsel %vm612_vm11, 1, %v1505_v6 }
 0x122   :  { %vm620_vm12 = vcmp.gt.f32.partialorder %v619_v14, %v613_v16 }
 0x123   :  { %v621_v18 = vsel %vm620_vm12, %v619_v14, %v613_v16  ;;  %v622_v21 = vsel %vm620_vm12, 2, %v614_v17 }
 0x124   :  { %vm628_vm13 = vcmp.gt.f32.partialorder %v627_v62, %v621_v18 }
 0x125   :  { %v629_v23 = vsel %vm628_vm13, %v627_v62, %v621_v18  ;;  %v630_v24 = vsel %vm628_vm13, 3, %v622_v21  ;;  %v1509_v18 = vmov 1966171168  }
 0x126   :  { %vm636_vm14 = vcmp.gt.f32.partialorder %v635_v22, %v629_v23 }
 0x127   :  { %v637_v25 = vsel %vm636_vm14, %v635_v22, %v629_v23  ;;  %v638_v34 = vsel %vm636_vm14, 4, %v630_v24 }
 0x128   :  { %640 = vst [vmem:[#allocation2 + $0x28] sm:$0x1f] %v638_v34  ;;  %v642_v36 = vadd.f32 %v637_v25, %v1735_v35 }
 0x12a   :  { %v649_v37 = vsel %vm648_vm15, %v642_v36, %v542_v27 }
 0x12b   :  { %v712_v40 = vrot.slane %v649_v37, %v1662_v30  ;;  %v717_v41 = vrot.slane %v649_v37, %v1665_v31  ;;  %v725_v42 = vrot.slane %v649_v37, %v1668_v32  ;;  %v733_v46 = vrot.slane %v649_v37, %v1674_v38 }
 0x12c   :  { %v741_v35 = vrot.slane %v649_v37, %v1686_v44 }
 0x12d   :  { %v713_v43 = vadd.f32 %v712_v40, %v1670_v33  ;;  %v718_v45 = vadd.f32 %v717_v41, %v1653_v26  ;;  %v726_v47 = vadd.f32 %v725_v42, %v1659_v29  ;;  %v734_v51 = vadd.f32 %v733_v46, %v1698_v53 }
 0x12e   :  { %v742_v55 = vadd.f32 %v741_v35, %v1703_v57 }
 0x12f   :  { %vm719_vm1 = vcmp.gt.f32.partialorder %v718_v45, %v713_v43 }
 0x130   :  { %v720_v49 = vsel %vm719_vm1, %v718_v45, %v713_v43  ;;  %v721_v50 = vsel %vm719_vm1, 1, %v1505_v6 }
 0x131   :  { %vm727_vm2 = vcmp.gt.f32.partialorder %v726_v47, %v720_v49 }
 0x132   :  { %v728_v4 = vsel %vm727_vm2, %v726_v47, %v720_v49  ;;  %v729_v54 = vsel %vm727_vm2, 2, %v721_v50 }
 0x133   :  { %vm735_vm3 = vcmp.gt.f32.partialorder %v734_v51, %v728_v4 }
 0x134   :  { %v736_v56 = vsel %vm735_vm3, %v734_v51, %v728_v4  ;;  %v737_v58 = vsel %vm735_vm3, 3, %v729_v54 }
 0x135   :  { %vm743_vm4 = vcmp.gt.f32.partialorder %v742_v55, %v736_v56 }
 0x136   :  { %v744_v59 = vsel %vm743_vm4, %v742_v55, %v736_v56  ;;  %v745_v63 = vsel %vm743_vm4, 4, %v737_v58 }
 0x137   :  { %747 = vst [vmem:[#allocation2 + $0x30] sm:$0x1f] %v745_v63  ;;  %v749_v0 = vadd.f32 %v744_v59, %v1752_v60 }
 0x139   :  { %v756_v1 = vsel %vm755_vm5, %v749_v0, %v649_v37 }
 0x13a   :  { %v819_v2 = vrot.slane %v756_v1, %v1662_v30  ;;  %v824_v3 = vrot.slane %v756_v1, %v1665_v31  ;;  %v832_v5 = vrot.slane %v756_v1, %v1668_v32  ;;  %v840_v8 = vrot.slane %v756_v1, %v1674_v38 }
 0x13b   :  { %v848_v60 = vrot.slane %v756_v1, %v1686_v44 }
 0x13c   :  { %v820_v7 = vadd.f32 %v819_v2, %v1670_v33  ;;  %v825_v27 = vadd.f32 %v824_v3, %v1653_v26  ;;  %v833_v9 = vadd.f32 %v832_v5, %v1659_v29  ;;  %v841_v32 = vadd.f32 %v840_v8, %v1698_v53  ;;  %v1044_v2 = vld [vmem:[#allocation2 + $0x28] sm:$0x1f] }
 0x13d   :  { %v861_v33 = vrot.slane %v857_v10, %v1662_v30  ;;  %v849_v26 = vadd.f32 %v848_v60, %v1703_v57  ;;  %v906_v57 = vunpack.c.l.s4 %v1509_v18 }
 0x13e   :  { %vm826_vm7 = vcmp.gt.f32.partialorder %v825_v27, %v820_v7  ;;  %v991_v4 = vld [vmem:[#allocation2 + $0x30] sm:$0x1f] }
 0x13f   :  { %v827_v11 = vsel %vm826_vm7, %v825_v27, %v820_v7  ;;  %v828_v31 = vsel %vm826_vm7, 1, %v1505_v6  ;;  %vm862_vm11 = vcmp.eq.s32.totalorder %v861_v33, 1  ;;  %v907_v24 = vunpack.c.0.s8 %v906_v57 }
 0x140   :  { %vm834_vm8 = vcmp.gt.f32.partialorder %v833_v9, %v827_v11  ;;  %v1023_v7 = vcombine.high %v991_v4, %v991_v4 }
 0x141   :  { %v835_v12 = vsel %vm834_vm8, %v833_v9, %v827_v11  ;;  %v836_v13 = vsel %vm834_vm8, 2, %v828_v31 }
 0x142   :  { %vm842_vm9 = vcmp.gt.f32.partialorder %v841_v32, %v835_v12 }
 0x143   :  { %v843_v38 = vsel %vm842_vm9, %v841_v32, %v835_v12  ;;  %v844_v14 = vsel %vm842_vm9, 3, %v836_v13 }
 0x144   :  { %vm850_vm10 = vcmp.gt.f32.partialorder %v849_v26, %v843_v38 }
 0x145   :  { %v851_v29 = vsel %vm850_vm10, %v849_v26, %v843_v38  ;;  %v852_v44 = vsel %vm850_vm10, 4, %v844_v14  ;;  %v1097_v26 = vld [vmem:[#allocation2 + $0x20] sm:$0x1f] }
 0x146   :  { %854 = vst [vmem:[#allocation2 + $0x38] sm:$0x1f] %v852_v44  ;;  %v856_v19 = vadd.f32 %v851_v29, %v1755_v61  ;;  %v1076_v44 = vcombine.high %v1044_v2, %v1044_v2 }
 0x148   :  { %v863_v15 = vsel %vm862_vm11, %v856_v19, %v756_v1 }
 0x149   :  { %v865_v16 = vrot.slane %v863_v15, 7 }
 0x14b   :  { %vm867_vm12 = vcmp.gt.f32.partialorder %v863_v15, %v865_v16 }
 0x14c   :  { %v868_v53 = vsel %vm867_vm12, %v863_v15, %v865_v16  ;;  %v869_v17 = vsel %vm867_vm12, 1, %v1505_v6  ;;  %v1843_v6 = vsub.s32 %v907_v24, %v1657_v28  ;;  %v1848_v28 = vadd.s32 4294967295, %v1679_v39 }
 0x14d   :  { %v871_v30 = vrot.slane %v868_v53, 7  ;;  %v875_v62 = vrot.slane %v869_v17, 7  ;;  %v890_v37 = vld [vmem:[#allocation2 + $0x38] sm:$0x1f] }
 0x14e   :  { %v938_v40 = vld [vmem:[#allocation2 + $0x38] sm:$0x1f]  ;;  %v892_v42 = vrot.slane %v890_v37, 5  ;;  %v893_v43 = vrot.slane %v890_v37, 4  ;;  %v896_v45 = vrot.slane %v890_v37, 6  ;;  %v899_v47 = vrot.slane %v890_v37, 7 }
 0x14f   :  { %vm873_vm13 = vcmp.gt.f32.partialorder %v863_v15, %v871_v30  ;;  %v946_v48 = vrot.slane %v938_v40, %v1843_v6  ;;  %v970_v58 = vcombine.high %v938_v40, %v938_v40  ;;  %v999_v59 = vrot.slane %v991_v4, %v1843_v6 }
 0x150   :  { %v874_v20 = vsel %vm873_vm13, %v863_v15, %v871_v30  ;;  %v876_v21 = vsel %vm873_vm13, 2, %v875_v62  ;;  %vm903_vm4 = vcmp.eq.s32.totalorder %v1848_v28, 7  ;;  %vm935_vm5 = vcmp.ge.s32.totalorder %v1848_v28, 7 }
 0x151   :  { %v878_v22 = vrot.slane %v874_v20, 7  ;;  %v882_v23 = vrot.slane %v876_v21, 7  ;;  %v947_v56 = vcombine.high %v946_v48, %v946_v48  ;;  %v954_v0 = vrot.slane %v946_v48, %v1843_v6  ;;  %v1203_v48 = vld [vmem:[#allocation2 + $0x10] sm:$0x1f] }
 0x152   :  { %v977_v3 = vrot.slane %v970_v58, %v1843_v6  ;;  %v1000_v5 = vcombine.high %v999_v59, %v999_v59  ;;  %v1052_v60 = vrot.slane %v1044_v2, %v1843_v6  ;;  %vm986_vm8 = vcmp.eq.s32.totalorder %v1848_v28, 6 }
 0x153   :  { %vm880_vm14 = vcmp.gt.f32.partialorder %v863_v15, %v878_v22  ;;  %v961_v39 = vrot.slane %v947_v56, %v1843_v6  ;;  %v964_v9 = vcombine.high %v954_v0, %v954_v0  ;;  %v1007_v31 = vrot.slane %v999_v59, %v1843_v6 }
 0x154   :  { %v881_v25 = vsel %vm880_vm14, %v863_v15, %v878_v22  ;;  %v883_v34 = vsel %vm880_vm14, 3, %v882_v23  ;;  %v984_v12 = vrot.slane %v977_v3, %v1843_v6  ;;  %v1014_v33 = vrot.slane %v1000_v5, %v1843_v6  ;;  %v1150_v22 = vld [vmem:[#allocation2 + $0x18] sm:$0x1f]  ;;  %v1256_v5 = vld [vmem:[#allocation2 + $0x8] sm:$0x1f] }
 0x155   :  { %v885_v61 = vrot.slane %v881_v25, 7  ;;  %v888_v36 = vrot.slane %v883_v34, 7  ;;  %v967_v11 = vcombine.high %v961_v39, %v961_v39  ;;  %vm988_vm11 = vcmp.ge.s32.totalorder %v1848_v28, 6 }
 0x156   :  { %v1030_v38 = vrot.slane %v1023_v7, %v1843_v6  ;;  %v1053_v29 = vcombine.high %v1052_v60, %v1052_v60  ;;  %v1105_v53 = vrot.slane %v1097_v26, %v1843_v6  ;;  %v1020_v17 = vcombine.high %v1014_v33, %v1014_v33 }
 0x157   :  { %vm887_vm15 = vcmp.gt.f32.partialorder %v863_v15, %v885_v61  ;;  %v1017_v15 = vcombine.high %v1007_v31, %v1007_v31  ;;  %vm1039_vm14 = vcmp.eq.s32.totalorder %v1848_v28, 5  ;;  %v1060_v62 = vrot.slane %v1052_v60, %v1843_v6 }
 0x158   :  { %v889_v41 = vsel %vm887_vm15, 4, %v888_v36  ;;  %v1037_v18 = vrot.slane %v1030_v38, %v1843_v6  ;;  %v1067_v20 = vrot.slane %v1053_v29, %v1843_v6  ;;  %v1083_v23 = vrot.slane %v1076_v44, %v1843_v6 }
 0x159   :  { %vm891_vm0 = vcmp.eq.s32.totalorder %v889_v41, 1  ;;  %vm895_vm1 = vcmp.eq.s32.totalorder %v889_v41, 2  ;;  %v904_v35 = vcombine.high %v889_v41, %v889_v41  ;;  %vm898_vm2 = vcmp.eq.s32.totalorder %v889_v41, 3 }
 0x15a   :  { %v894_v46 = vsel %vm891_vm0, %v892_v42, %v893_v43  ;;  %vm901_vm3 = vcmp.eq.s32.totalorder %v889_v41, 4  ;;  %v1106_v25 = vcombine.high %v1105_v53, %v1105_v53  ;;  %v1129_v34 = vcombine.high %v1097_v26, %v1097_v26 }
 0x15b   :  { %v897_v49 = vsel %vm895_vm1, %v896_v45, %v894_v46  ;;  %v911_v51 = vrot.slane %v904_v35, %v1843_v6  ;;  %vm1041_vm1 = vcmp.ge.s32.totalorder %v1848_v28, 5  ;;  %v1070_v36 = vcombine.high %v1060_v62, %v1060_v62 }
 0x15c   :  { %v900_v50 = vsel %vm898_vm2, %v899_v47, %v897_v49  ;;  %v1073_v41 = vcombine.high %v1067_v20, %v1067_v20  ;;  %v1113_v43 = vrot.slane %v1105_v53, %v1843_v6  ;;  %v1090_v45 = vrot.slane %v1083_v23, %v1843_v6 }
 0x15d   :  { %v902_v52 = vsel %vm901_vm3, %v890_v37, %v900_v50  ;;  %v1851_v54 = vrot.slane %v911_v51, %v1843_v6  ;;  %v1120_v47 = vrot.slane %v1106_v25, %v1843_v6  ;;  %v1136_v49 = vrot.slane %v1129_v34, %v1843_v6 }
 0x15e   :  { %v919_v55 = vcombine.high %v902_v52, %v902_v52  ;;  %v1211_v58 = vrot.slane %v1203_v48, %v1843_v6  ;;  %v1264_v31 = vrot.slane %v1256_v5, %v1843_v6 }
 0x15f   :  { %v1126_v59 = vcombine.high %v1120_v47, %v1120_v47 }
 0x160   :  { %v926_v63 = vrot.slane %v919_v55, %v1843_v6  ;;  %v1123_v55 = vcombine.high %v1113_v43, %v1113_v43 }
 0x162   :  { %v933_v1 = vrot.slane %v926_v63, %v1843_v6 }
 0x164   :  { %v934_v27 = vsel %vm903_vm4, %v1851_v54, %v933_v1  ;;  %vm1092_vm4 = vcmp.eq.s32.totalorder %v1848_v28, 4  ;;  %v1143_v1 = vrot.slane %v1136_v49, %v1843_v6 }
 0x165   :  { %v936_v8 = vsel %vm935_vm5, %v934_v27, 0  ;;  %vm939_vm6 = vcmp.eq.s32.totalorder %v934_v27, 1  ;;  %vm963_vm7 = vcmp.eq.s32.totalorder %v934_v27, 2  ;;  %vm966_vm9 = vcmp.eq.s32.totalorder %v934_v27, 3 }
 0x166   :  { %937 = vst [vmem:[%s1943_s6 + $0x7] sm:$0x1] %v936_v8  ;;  %v962_v10 = vsel %vm939_vm6, %v961_v39, %v938_v40  ;;  %vm969_vm10 = vcmp.eq.s32.totalorder %v934_v27, 4  ;;  %v1158_v40 = vrot.slane %v1150_v22, %v1843_v6  ;;  %v1212_v8 = vcombine.high %v1211_v58, %v1211_v58 }
 0x167   :  { %v965_v32 = vsel %vm963_vm7, %v964_v9, %v962_v10  ;;  %vm1094_vm7 = vcmp.ge.s32.totalorder %v1848_v28, 4  ;;  %v1235_v9 = vcombine.high %v1203_v48, %v1203_v48 }
 0x168   :  { %v968_v13 = vsel %vm966_vm9, %v967_v11, %v965_v32  ;;  %v1159_v51 = vcombine.high %v1158_v40, %v1158_v40  ;;  %v1166_v0 = vrot.slane %v1158_v40, %v1843_v6  ;;  %v1226_v38 = vrot.slane %v1212_v8, %v1843_v6 }
 0x169   :  { %v985_v14 = vsel %vm969_vm10, %v984_v12, %v968_v13  ;;  %vm1145_vm10 = vcmp.eq.s32.totalorder %v1848_v28, 3  ;;  %v1242_v29 = vrot.slane %v1235_v9, %v1843_v6 }
 0x16a   :  { %v987_v19 = vsel %vm986_vm8, %v1851_v54, %v985_v14  ;;  %v1176_v10 = vcombine.high %v1166_v0, %v1166_v0  ;;  %v1232_v62 = vcombine.high %v1226_v38, %v1226_v38 }
 0x16b   :  { %v989_v16 = vsel %vm988_vm11, %v987_v19, 0  ;;  %vm992_vm12 = vcmp.eq.s32.totalorder %v987_v19, 1  ;;  %vm1016_vm13 = vcmp.eq.s32.totalorder %v987_v19, 2  ;;  %vm1019_vm15 = vcmp.eq.s32.totalorder %v987_v19, 3 }
 0x16c   :  { %990 = vst [vmem:[%s1943_s6 + $0x6] sm:$0x1] %v989_v16  ;;  %v1015_v30 = vsel %vm992_vm12, %v1014_v33, %v991_v4  ;;  %vm1022_vm0 = vcmp.eq.s32.totalorder %v987_v19, 4  ;;  %v1182_v4 = vcombine.high %v1150_v22, %v1150_v22  ;;  %v1219_v33 = vrot.slane %v1211_v58, %v1843_v6 }
 0x16d   :  { %v1018_v57 = vsel %vm1016_vm13, %v1017_v15, %v1015_v30  ;;  %vm1147_vm13 = vcmp.ge.s32.totalorder %v1848_v28, 3  ;;  %v1265_v19 = vcombine.high %v1264_v31, %v1264_v31  ;;  %v1288_v15 = vcombine.high %v1256_v5, %v1256_v5 }
 0x16e   :  { %v1021_v21 = vsel %vm1019_vm15, %v1020_v17, %v1018_v57  ;;  %v1189_v7 = vrot.slane %v1182_v4, %v1843_v6  ;;  %v1229_v53 = vcombine.high %v1219_v33, %v1219_v33  ;;  %v1272_v30 = vrot.slane %v1264_v31, %v1843_v6 }
 0x16f   :  { %v1038_v24 = vsel %vm1022_vm0, %v1037_v18, %v1021_v21  ;;  %vm1198_vm0 = vcmp.eq.s32.totalorder %v1848_v28, 2  ;;  %v1249_v57 = vrot.slane %v1242_v29, %v1843_v6  ;;  %v1279_v21 = vrot.slane %v1265_v19, %v1843_v6 }
 0x170   :  { %v1040_v61 = vsel %vm1039_vm14, %v1851_v54, %v1038_v24  ;;  %v1196_v13 = vrot.slane %v1189_v7, %v1843_v6  ;;  %v1295_v23 = vrot.slane %v1288_v15, %v1843_v6  ;;  %v1282_v34 = vcombine.high %v1272_v30, %v1272_v30 }
 0x171   :  { %v1042_v37 = vsel %vm1041_vm1, %v1040_v61, 0  ;;  %vm1045_vm2 = vcmp.eq.s32.totalorder %v1040_v61, 1  ;;  %vm1069_vm3 = vcmp.eq.s32.totalorder %v1040_v61, 2  ;;  %vm1072_vm5 = vcmp.eq.s32.totalorder %v1040_v61, 3 }
 0x172   :  { %1043 = vst [vmem:[%s1943_s6 + $0x5] sm:$0x1] %v1042_v37  ;;  %v1068_v42 = vsel %vm1045_vm2, %v1067_v20, %v1044_v2  ;;  %vm1075_vm6 = vcmp.eq.s32.totalorder %v1040_v61, 4  ;;  %v1173_v2 = vrot.slane %v1159_v51, %v1843_v6  ;;  %v1302_v40 = vrot.slane %v1295_v23, %v1843_v6 }
 0x173   :  { %v1071_v46 = vsel %vm1069_vm3, %v1070_v36, %v1068_v42  ;;  %vm1200_vm3 = vcmp.ge.s32.totalorder %v1848_v28, 2  ;;  %v1285_v36 = vcombine.high %v1279_v21, %v1279_v21 }
 0x174   :  { %v1074_v35 = vsel %vm1072_vm5, %v1073_v41, %v1071_v46  ;;  %v1179_v32 = vcombine.high %v1173_v2, %v1173_v2 }
 0x175   :  { %v1091_v50 = vsel %vm1075_vm6, %v1090_v45, %v1074_v35 }
 0x176   :  { %v1093_v52 = vsel %vm1092_vm4, %v1851_v54, %v1091_v50 }
 0x177   :  { %v1095_v56 = vsel %vm1094_vm7, %v1093_v52, 0  ;;  %vm1098_vm8 = vcmp.eq.s32.totalorder %v1093_v52, 1  ;;  %vm1122_vm9 = vcmp.eq.s32.totalorder %v1093_v52, 2  ;;  %vm1125_vm11 = vcmp.eq.s32.totalorder %v1093_v52, 3 }
 0x178   :  { %1096 = vst [vmem:[%s1943_s6 + $0x4] sm:$0x1] %v1095_v56  ;;  %v1121_v63 = vsel %vm1098_vm8, %v1120_v47, %v1097_v26  ;;  %vm1128_vm12 = vcmp.eq.s32.totalorder %v1093_v52, 4  ;;  %vm1251_vm7 = vcmp.eq.s32.totalorder %v1848_v28, 1 }
 0x179   :  { %v1124_v39 = vsel %vm1122_vm9, %v1123_v55, %v1121_v63  ;;  %vm1253_vm9 = vcmp.ge.s32.totalorder %v1848_v28, 1 }
 0x17a   :  { %v1127_v3 = vsel %vm1125_vm11, %v1126_v59, %v1124_v39 }
 0x17b   :  { %v1144_v27 = vsel %vm1128_vm12, %v1143_v1, %v1127_v3 }
 0x17c   :  { %v1146_v60 = vsel %vm1145_vm10, %v1851_v54, %v1144_v27 }
 0x17d   :  { %v1148_v11 = vsel %vm1147_vm13, %v1146_v60, 0  ;;  %vm1151_vm14 = vcmp.eq.s32.totalorder %v1146_v60, 1  ;;  %vm1175_vm15 = vcmp.eq.s32.totalorder %v1146_v60, 2  ;;  %vm1178_vm1 = vcmp.eq.s32.totalorder %v1146_v60, 3 }
 0x17e   :  { %1149 = vst [vmem:[%s1943_s6 + $0x3] sm:$0x1] %v1148_v11  ;;  %v1174_v12 = vsel %vm1151_vm14, %v1173_v2, %v1150_v22  ;;  %vm1181_vm2 = vcmp.eq.s32.totalorder %v1146_v60, 4  ;;  %vm1304_vm13 = vcmp.eq.s32.totalorder %v1848_v28, 0 }
 0x17f   :  { %v1177_v26 = vsel %vm1175_vm15, %v1176_v10, %v1174_v12  ;;  %vm1306_vm15 = vcmp.ge.s32.totalorder %v1848_v28, 0 }
 0x180   :  { %v1180_v14 = vsel %vm1178_vm1, %v1179_v32, %v1177_v26 }
 0x181   :  { %v1197_v44 = vsel %vm1181_vm2, %v1196_v13, %v1180_v14 }
 0x182   :  { %v1199_v16 = vsel %vm1198_vm0, %v1851_v54, %v1197_v44 }
 0x183   :  { %v1201_v17 = vsel %vm1200_vm3, %v1199_v16, 0  ;;  %vm1204_vm4 = vcmp.eq.s32.totalorder %v1199_v16, 1  ;;  %vm1228_vm5 = vcmp.eq.s32.totalorder %v1199_v16, 2  ;;  %vm1231_vm6 = vcmp.eq.s32.totalorder %v1199_v16, 3 }
 0x184   :  { %1202 = vst [vmem:[%s1943_s6 + $0x2] sm:$0x1] %v1201_v17  ;;  %v1227_v18 = vsel %vm1204_vm4, %v1226_v38, %v1203_v48  ;;  %vm1234_vm8 = vcmp.eq.s32.totalorder %v1199_v16, 4 }
 0x185   :  { %v1230_v20 = vsel %vm1228_vm5, %v1229_v53, %v1227_v18 }
 0x186   :  { %v1233_v22 = vsel %vm1231_vm6, %v1232_v62, %v1230_v20 }
 0x187   :  { %v1250_v24 = vsel %vm1234_vm8, %v1249_v57, %v1233_v22 }
 0x188   :  { %v1252_v25 = vsel %vm1251_vm7, %v1851_v54, %v1250_v24 }
 0x189   :  { %v1254_v61 = vsel %vm1253_vm9, %v1252_v25, 0  ;;  %vm1257_vm10 = vcmp.eq.s32.totalorder %v1252_v25, 1  ;;  %vm1281_vm11 = vcmp.eq.s32.totalorder %v1252_v25, 2  ;;  %vm1284_vm12 = vcmp.eq.s32.totalorder %v1252_v25, 3 }
 0x18a   :  { %1255 = vst [vmem:[%s1943_s6 + $0x1] sm:$0x1] %v1254_v61  ;;  %v1280_v37 = vsel %vm1257_vm10, %v1279_v21, %v1256_v5  ;;  %vm1287_vm14 = vcmp.eq.s32.totalorder %v1252_v25, 4 }
 0x18b   :  { %v1283_v41 = vsel %vm1281_vm11, %v1282_v34, %v1280_v37 }
 0x18c   :  { %v1286_v42 = vsel %vm1284_vm12, %v1285_v36, %v1283_v41 }
 0x18d   :  { %v1303_v43 = vsel %vm1287_vm14, %v1302_v40, %v1286_v42 }
 0x18e   :  { %v1305_v45 = vsel %vm1304_vm13, %v1851_v54, %v1303_v43 }
 0x18f   :  { %v1307_v46 = vsel %vm1306_vm15, %v1305_v45, 0 }
 0x190   :  { %1308 = vst [vmem:[%s1943_s6] sm:$0x1] %v1307_v46 }

</bundles_post_ra>
